<compile_context>
chip_gen: v5e
topology: v5e:2x2
jax: 0.10.0
libtpu: 0.0.40
codegen_flags: <defaults>
</compile_context>

<pallas_src>
import math

import jax
import jax.numpy as jnp
from jax import lax
from jax.experimental import pallas as pl
from jax.experimental.pallas import tpu as pltpu


# ----------------------------------------------------------------------------
# set_up_dimensions (faithful port of the PyTorch helper, plain Python)
# ----------------------------------------------------------------------------
def set_up_dimensions(config):
    event = config['event_config']
    patient = config['patient_config']
    mode = config['aggregation_mode']
    if mode in ('element-wise-sum-multiplication', 'element-wise-sum',
                'element-wise-multiplication'):
        config['patient_config']['output_dim'] = event['continuous_output_dim']
        config['time_config']['output_dim'] = event['continuous_output_dim']
        config['temporal_model']['input_size'] = event['continuous_output_dim']
    elif mode == 'mask-multiplication':
        config['time_config']['output_dim'] = event['continuous_output_dim']
        if not config['use_patient_info']:
            config['temporal_model']['input_size'] = event['continuous_output_dim']
        else:
            config['temporal_model']['input_size'] = (
                event['continuous_output_dim'] + patient['output_dim'])
    elif mode == 'concat':
        if config['use_time_info'] and config['use_patient_info']:
            config['temporal_model']['input_size'] = (
                event['continuous_output_dim'] + config['time_config']['output_dim']
                + patient['output_dim'])
        elif config['use_time_info'] and (not config['use_patient_info']):
            config['temporal_model']['input_size'] = (
                event['continuous_output_dim'] + config['time_config']['output_dim'])
        elif (not config['use_time_info']) and config['use_patient_info']:
            config['temporal_model']['input_size'] = (
                event['continuous_output_dim'] + patient['output_dim'])
        else:
            config['temporal_model']['input_size'] = event['continuous_output_dim']
    if config['model_type'] == 'attention':
        config['temporal_model']['hidden_size'] = config['temporal_model']['input_size']
    config['temporal_model']['attn_heads'] = (
        config['temporal_model']['input_size'] // config['temporal_model']['hidden_size'])
    if config['temporal_model']['bidirectional'] and config['model_type'] == 'lstm':
        config['classifier']['input_dim'] = config['temporal_model']['hidden_size'] * 2
    elif config['model_type'] == 'attention':
        config['classifier']['input_dim'] = (
            config['temporal_model']['hidden_size'] * config['temporal_model']['attn_heads'])
    else:
        config['classifier']['input_dim'] = config['temporal_model']['hidden_size']
    config['classifier']['patient_embedding_dim'] = config['patient_config']['output_dim']
    return config


def _round_up(n, m):
    return ((n + m - 1) // m) * m


def _recip(x):
    # EUP approximate reciprocal (free slot) + one Newton step on the VPU to
    # recover fp32-level accuracy (keeps tolerance vs the divide-based ref).
    r = pl.reciprocal(x, approx=True)
    return r * (2.0 - x * r)


# ----------------------------------------------------------------------------
# Pallas kernel: TB batch rows per grid step
# ----------------------------------------------------------------------------
def hba1c_kernel(seq_len_ref,                          # (TB, 1)  int32
                 x_ref,                                # (TB, S, C)
                 w_ev_ref, b_ev_ref,                   # (C, D), (1, D)
                 w_qkv_ref,                            # (D, 3D) fused [wq|wk|wv]
                 w_pool_ref, b_pool_ref,               # (1, D), (1, 1)
                 w1_ref, b1_ref, w2_ref, b2_ref,       # (D, H), (1, H), (H, NC), (1, NC)
                 slab_ref, self_attn_ref):             # (TB, LANE), (TB, S, SA_LANE)
    TB, S, C = x_ref.shape
    D = w_ev_ref.shape[1]
    NC = w2_ref.shape[1]
    LANE = slab_ref.shape[1]
    SA_LANE = self_attn_ref.shape[2]
    scale = 1.0 / math.sqrt(D)

    # 1) event continuous MLP -- one big (TB*S, C) @ (C, D) MXU matmul.
    x2 = x_ref[...].reshape(TB * S, C)
    h2 = jnp.tanh(jnp.dot(x2, w_ev_ref[...],
                          preferred_element_type=jnp.float32) + b_ev_ref[...])  # (TB*S, D)

    # 2) single-head self-attention (TimeModel, attention variant).
    #    Fused QKV projection: one (TB*S, D) @ (D, 3D) MXU pass, then lane-slice.
    qkv = jnp.dot(h2, w_qkv_ref[...], preferred_element_type=jnp.float32)        # (TB*S, 3D)
    q = qkv[:, 0 * D:1 * D].reshape(TB, S, D)
    k = qkv[:, 1 * D:2 * D].reshape(TB, S, D)
    v = qkv[:, 2 * D:3 * D].reshape(TB, S, D)

    scores = jnp.einsum('bqd,bkd->bqk', q, k,
                        preferred_element_type=jnp.float32) * scale              # (TB, S, S)

    sl = seq_len_ref[...]                                                         # (TB, 1)
    key_pos = lax.broadcasted_iota(jnp.int32, (TB, S, S), 2)
    scores = jnp.where(key_pos < sl.reshape(TB, 1, 1), scores, -1e30)

    m = jnp.max(scores, axis=-1, keepdims=True)
    e = jnp.exp(scores - m)
    self_attn = e * _recip(jnp.sum(e, axis=-1, keepdims=True))                    # (TB, S, S)
    ctx = jnp.einsum('bqk,bkd->bqd', self_attn, v,
                     preferred_element_type=jnp.float32)                          # (TB, S, D)

    # Lane-dense self-attention output: zero-pad the key dim to SA_LANE so the
    # writeback is unmasked full-lane vst (wrapper slices [:, :, :S]).
    sa_pad = jnp.zeros((TB, S, SA_LANE - S), jnp.float32)
    self_attn_ref[...] = jnp.concatenate([self_attn, sa_pad], axis=-1)

    # 3) attention pooling over valid time steps (VPU multiply-reduce; no
    #    degenerate 1-wide MXU matmuls, no XLU transpose of the weights).
    pvec = w_pool_ref[...].reshape(1, 1, D)
    p = jnp.sum(jnp.tanh(ctx) * pvec, axis=-1) + b_pool_ref[...]                  # (TB, S)
    qry_pos = lax.broadcasted_iota(jnp.int32, (TB, S), 1)
    p = jnp.where(qry_pos < sl, p, -1e30)
    pm = jnp.max(p, axis=-1, keepdims=True)
    pe = jnp.exp(p - pm)
    pool_w = pe * _recip(jnp.sum(pe, axis=-1, keepdims=True))                     # (TB, S)
    pooled = jnp.sum(pool_w[:, :, None] * ctx, axis=1)                            # (TB, D)

    # 4) classifier MLP (dropout p=0.0 -> identity at inference).
    z = jnp.maximum(
        jnp.dot(pooled, w1_ref[...], preferred_element_type=jnp.float32) + b1_ref[...],
        0.0)
    logits = jnp.dot(z, w2_ref[...],
                     preferred_element_type=jnp.float32) + b2_ref[...]            # (TB, NC)

    # Lane-dense packed output: [logits | pool_w | zero-pad] -> (TB, LANE)
    pad = jnp.zeros((TB, LANE - NC - S), jnp.float32)
    slab_ref[...] = jnp.concatenate([logits, pool_w, pad], axis=-1)


# ----------------------------------------------------------------------------
# Wrapper
# ----------------------------------------------------------------------------
def hba1c_forward(x, seq_lens, params, *, block_b=128):
    B, S, C = x.shape
    D = params['w_ev'].shape[1]
    H = params['w1'].shape[1]
    NC = params['w2'].shape[1]
    LANE = max(128, _round_up(NC + S, 128))
    SA_LANE = max(128, _round_up(S, 128))

    # Batch block size: multiple of 8 (sublane), capped at padded batch.
    TB = max(8, min(_round_up(block_b, 8), _round_up(B, 8)))
    Bp = _round_up(B, TB)
    if Bp != B:
        x = jnp.pad(x, ((0, Bp - B), (0, 0), (0, 0)))
        seq_lens = jnp.pad(seq_lens, (0, Bp - B), constant_values=1)
    sl2 = seq_lens.astype(jnp.int32).reshape(Bp, 1)
    w_pool_row = params['w_pool'].reshape(1, D)                      # (D,1) -> (1,D)
    w_qkv = jnp.concatenate([params['wq'], params['wk'], params['wv']], axis=1)  # (D, 3D)

    full = lambda shape: pl.BlockSpec(shape, lambda i: (0,) * len(shape))

    grid_spec = pltpu.PrefetchScalarGridSpec(
        num_scalar_prefetch=0,
        grid=(Bp // TB,),
        in_specs=[
            pl.BlockSpec((TB, 1), lambda i: (i, 0)),
            pl.BlockSpec((TB, S, C), lambda i: (i, 0, 0)),
            full((C, D)), full((1, D)),
            full((D, 3 * D)),
            full((1, D)), full((1, 1)),
            full((D, H)), full((1, H)),
            full((H, NC)), full((1, NC)),
        ],
        out_specs=[
            pl.BlockSpec((TB, LANE), lambda i: (i, 0)),
            pl.BlockSpec((TB, S, SA_LANE), lambda i: (i, 0, 0)),
        ],
    )
    out_shapes = (
        jax.ShapeDtypeStruct((Bp, LANE), jnp.float32),
        jax.ShapeDtypeStruct((Bp, S, SA_LANE), jnp.float32),
    )

    weight_bytes = 4 * (C * D + D + 3 * D * D + D + 1 + D * H + H + H * NC + NC)
    cost = pl.CostEstimate(
        flops=2 * Bp * S * (C * D + 3 * D * D + 2 * S * D) + 2 * Bp * (D * H + H * NC),
        transcendentals=Bp * S * (2 * D + S + 1),
        bytes_accessed=4 * (Bp * S * C + Bp + Bp * LANE + Bp * S * SA_LANE) + weight_bytes,
    )

    slab, self_attn = pl.pallas_call(
        hba1c_kernel,
        out_shape=out_shapes,
        grid_spec=grid_spec,
        compiler_params=pltpu.CompilerParams(dimension_semantics=("parallel",)),
        cost_estimate=cost,
    )(sl2, x,
      params['w_ev'], params['b_ev'],
      w_qkv,
      w_pool_row, params['b_pool'],
      params['w1'], params['b1'], params['w2'], params['b2'])

    out = slab[:B, :NC]                       # (B, NC)   logits
    attention = slab[:B, NC:NC + S]           # (B, S)    classifier pooling weights
    self_attn = self_attn[:B, :, :S]          # (B, S, S) self-attention weights
    # model_type == 'attention' -> (out, [attention, self_attention_weights])
    return out, [attention, self_attn]


# Pure-JAX reference for correctness check.
def hba1c_reference(x, seq_lens, params):
    B, S, _ = x.shape
    D = params['w_ev'].shape[1]
    h = jnp.tanh(x @ params['w_ev'] + params['b_ev'])
    q = h @ params['wq']; k = h @ params['wk']; v = h @ params['wv']
    scores = jnp.einsum('bqd,bkd->bqk', q, k) / math.sqrt(D)
    key_mask = jnp.arange(S)[None, None, :] < seq_lens[:, None, None]
    scores = jnp.where(key_mask, scores, -1e30)
    attn = jax.nn.softmax(scores, axis=-1)
    ctx = jnp.einsum('bqk,bkd->bqd', attn, v)
    p = jnp.tanh(ctx) @ params['w_pool'] + params['b_pool']          # (B, S, 1)
    qry_mask = (jnp.arange(S)[None, :] < seq_lens[:, None])[..., None]
    p = jnp.where(qry_mask, p, -1e30)
    pw = jax.nn.softmax(p, axis=1)
    pooled = jnp.einsum('bsd,bso->bd', ctx, pw)
    z = jax.nn.relu(pooled @ params['w1'] + params['b1'])
    logits = z @ params['w2'] + params['b2']
    return logits, pw[..., 0], attn


if __name__ == "__main__":
    # Small config consistent with the module's forward.
    config = {
        'aggregation_mode': 'concat',
        'use_patient_info': False,
        'use_time_info': False,
        'model_type': 'attention',
        'max_len': 8,
        'event_config': {
            'categoricals': [], 'continuous': ['f%d' % i for i in range(6)],
            'categorical_representation': 'embedding',
            'continuous_representation': 'mlp',
            'categorical_embeddings': {}, 'continuous_hidden_dims': [32],
            'continuous_output_dim': 32, 'tf_activation': 'tanh'},
        'patient_config': {
            'representation_type': 'mlp', 'num_inputs': 5, 'hidden_dims': [16],
            'activation': 'tanh', 'output_dim': 16},
        'time_config': {
            'representation_type': 'mlp', 'hidden_dims': [16],
            'projection_size': 16, 'activation': 'tanh', 'output_dim': 16,
            'embeddings_init_std': 0.02},
        'temporal_model': {'hidden_size': 32, 'bidirectional': False},
        'classifier': {'hidden_dim': 16, 'output_dropout': 0.0,
                       'num_classes': 3, 'use_patient_info': False},
    }
    config = set_up_dimensions(config)

    B, S = 20, config['max_len']                 # B not a multiple of TB -> pad path
    C = len(config['event_config']['continuous'])
    D = config['event_config']['continuous_output_dim']
    H = config['classifier']['hidden_dim']
    NC = config['classifier']['num_classes']
    P = config['patient_config']['num_inputs']
    PD = config['patient_config']['output_dim']

    key = jax.random.PRNGKey(0)
    ks = jax.random.split(key, 16)
    s = 0.1
    params = {
        'w_ev':   s * jax.random.normal(ks[0], (C, D), jnp.float32),
        'b_ev':   s * jax.random.normal(ks[1], (1, D), jnp.float32),
        'wq':     s * jax.random.normal(ks[2], (D, D), jnp.float32),
        'wk':     s * jax.random.normal(ks[3], (D, D), jnp.float32),
        'wv':     s * jax.random.normal(ks[4], (D, D), jnp.float32),
        'w_pool': s * jax.random.normal(ks[5], (D, 1), jnp.float32),
        'b_pool': s * jax.random.normal(ks[6], (1, 1), jnp.float32),
        'w1':     s * jax.random.normal(ks[7], (D, H), jnp.float32),
        'b1':     s * jax.random.normal(ks[8], (1, H), jnp.float32),
        'w2':     s * jax.random.normal(ks[9], (H, NC), jnp.float32),
        'b2':     s * jax.random.normal(ks[10], (1, NC), jnp.float32),
        'w_pat':  s * jax.random.normal(ks[11], (P, PD), jnp.float32),
        'b_pat':  s * jax.random.normal(ks[12], (1, PD), jnp.float32),
    }

    x = jax.random.normal(ks[13], (B, S, C), jnp.float32)
    x_patient = jax.random.normal(ks[14], (B, P), jnp.float32)
    seq_lens = jax.random.randint(ks[15], (B,), 1, S + 1).astype(jnp.int32)

    # Patient representation (plain-JAX glue; unused because classifier
    # use_patient_info=False, mirrors x_rep['patient_representation']).
    patient_repr = jnp.tanh(x_patient @ params['w_pat'] + params['b_pat'])
    _ = patient_repr

    ref_out, ref_attn, ref_self_attn = hba1c_reference(x, seq_lens, params)

    # (a) multi-block grid + batch-padding path (TB=8, grid of 3 blocks)
    # (b) single-block path (TB=24 covers the padded batch in one grid step)
    for bb in (8, 32):
        out, (attention, self_attention_weights) = hba1c_forward(
            x, seq_lens, params, block_b=bb)
        out = jax.block_until_ready(out)
        attention = jax.block_until_ready(attention)
        self_attention_weights = jax.block_until_ready(self_attention_weights)

        assert jnp.allclose(out, ref_out, atol=2e-4), f"logits mismatch (block_b={bb})"
        assert jnp.allclose(attention, ref_attn, atol=2e-4), \
            f"pool attn mismatch (block_b={bb})"
        assert jnp.allclose(self_attention_weights, ref_self_attn, atol=2e-4), \
            f"self attn mismatch (block_b={bb})"

    print("KERNEL_OK")
</pallas_src>

<mosaic_0001>
module attributes {stable_mosaic.version = 11 : i64} {
  func.func @hba1c_kernel(%arg0: i32, %arg1: memref<8x1xi32, #tpu.memory_space<vmem>>, %arg2: memref<8x8x6xf32, #tpu.memory_space<vmem>>, %arg3: memref<6x32xf32, #tpu.memory_space<vmem>>, %arg4: memref<1x32xf32, #tpu.memory_space<vmem>>, %arg5: memref<32x96xf32, #tpu.memory_space<vmem>>, %arg6: memref<1x32xf32, #tpu.memory_space<vmem>>, %arg7: memref<1x1xf32, #tpu.memory_space<vmem>>, %arg8: memref<32x16xf32, #tpu.memory_space<vmem>>, %arg9: memref<1x16xf32, #tpu.memory_space<vmem>>, %arg10: memref<16x3xf32, #tpu.memory_space<vmem>>, %arg11: memref<1x3xf32, #tpu.memory_space<vmem>>, %arg12: memref<8x128xf32, #tpu.memory_space<vmem>>, %arg13: memref<8x8x128xf32, #tpu.memory_space<vmem>>) attributes {dimension_semantics = [#tpu.dimension_semantics<parallel>], iteration_bounds = array<i64: 3>, scalar_prefetch = 0 : i64, scratch_operands = 0 : i64, tpu.core_type = #tpu.core_type<tc>, window_params = [{transform_indices = @transform_0, window_bounds = array<i64: 8, 1>}, {transform_indices = @transform_1, window_bounds = array<i64: 8, 8, 6>}, {pipeline_mode = #tpu.pipeline_mode<synchronous>, transform_indices = @transform_2, window_bounds = array<i64: 6, 32>}, {pipeline_mode = #tpu.pipeline_mode<synchronous>, transform_indices = @transform_3, window_bounds = array<i64: 1, 32>}, {pipeline_mode = #tpu.pipeline_mode<synchronous>, transform_indices = @transform_4, window_bounds = array<i64: 32, 96>}, {pipeline_mode = #tpu.pipeline_mode<synchronous>, transform_indices = @transform_5, window_bounds = array<i64: 1, 32>}, {pipeline_mode = #tpu.pipeline_mode<synchronous>, transform_indices = @transform_6, window_bounds = array<i64: 1, 1>}, {pipeline_mode = #tpu.pipeline_mode<synchronous>, transform_indices = @transform_7, window_bounds = array<i64: 32, 16>}, {pipeline_mode = #tpu.pipeline_mode<synchronous>, transform_indices = @transform_8, window_bounds = array<i64: 1, 16>}, {pipeline_mode = #tpu.pipeline_mode<synchronous>, transform_indices = @transform_9, window_bounds = array<i64: 16, 3>}, {pipeline_mode = #tpu.pipeline_mode<synchronous>, transform_indices = @transform_10, window_bounds = array<i64: 1, 3>}, {transform_indices = @transform_11, window_bounds = array<i64: 8, 128>}, {transform_indices = @transform_12, window_bounds = array<i64: 8, 8, 128>}]} {
    %c0 = arith.constant 0 : index
    %c0_0 = arith.constant 0 : index
    %c0_1 = arith.constant 0 : index
    %0 = vector.load %arg2[%c0, %c0_0, %c0_1] : memref<8x8x6xf32, #tpu.memory_space<vmem>>, vector<8x8x6xf32>
    %1 = vector.shape_cast %0 : vector<8x8x6xf32> to vector<64x6xf32>
    %c0_2 = arith.constant 0 : index
    %c0_3 = arith.constant 0 : index
    %2 = vector.load %arg3[%c0_2, %c0_3] : memref<6x32xf32, #tpu.memory_space<vmem>>, vector<6x32xf32>
    %cst = arith.constant dense<0.000000e+00> : vector<64x32xf32>
    %3 = tpu.matmul %1, %2, %cst {dimension_numbers = #tpu.dot_dimension_numbers<[1], [0], [0], [1], [0, 0, 1, 1], [], []>} : vector<64x6xf32>, vector<6x32xf32>, vector<64x32xf32> -> vector<64x32xf32>
    %c0_4 = arith.constant 0 : index
    %c0_5 = arith.constant 0 : index
    %4 = vector.load %arg4[%c0_4, %c0_5] : memref<1x32xf32, #tpu.memory_space<vmem>>, vector<1x32xf32>
    %5 = vector.broadcast %4 : vector<1x32xf32> to vector<64x32xf32>
    %6 = arith.addf %3, %5 : vector<64x32xf32>
    %7 = math.tanh %6 : vector<64x32xf32>
    %c0_6 = arith.constant 0 : index
    %c0_7 = arith.constant 0 : index
    %8 = vector.load %arg5[%c0_6, %c0_7] : memref<32x96xf32, #tpu.memory_space<vmem>>, vector<32x96xf32>
    %cst_8 = arith.constant dense<0.000000e+00> : vector<64x96xf32>
    %9 = tpu.matmul %7, %8, %cst_8 {dimension_numbers = #tpu.dot_dimension_numbers<[1], [0], [0], [1], [0, 0, 1, 1], [], []>} : vector<64x32xf32>, vector<32x96xf32>, vector<64x96xf32> -> vector<64x96xf32>
    %10 = vector.extract_strided_slice %9 {offsets = [0, 0], sizes = [64, 32], strides = [1, 1]} : vector<64x96xf32> to vector<64x32xf32>
    %11 = vector.shape_cast %10 : vector<64x32xf32> to vector<8x8x32xf32>
    %12 = vector.extract_strided_slice %9 {offsets = [0, 32], sizes = [64, 32], strides = [1, 1]} : vector<64x96xf32> to vector<64x32xf32>
    %13 = vector.shape_cast %12 : vector<64x32xf32> to vector<8x8x32xf32>
    %14 = vector.extract_strided_slice %9 {offsets = [0, 64], sizes = [64, 32], strides = [1, 1]} : vector<64x96xf32> to vector<64x32xf32>
    %15 = vector.shape_cast %14 : vector<64x32xf32> to vector<8x8x32xf32>
    "tpu.trace_start"() <{level = 10 : i32, message = "bqd,bkd->bqk"}> : () -> ()
    %cst_9 = arith.constant dense<0.000000e+00> : vector<8x8x8xf32>
    %16 = tpu.matmul %11, %13, %cst_9 {dimension_numbers = #tpu.dot_dimension_numbers<[2], [2], [1], [1], [0, 0, 0, 1, 1, 1], [0], [0]>} : vector<8x8x32xf32>, vector<8x8x32xf32>, vector<8x8x8xf32> -> vector<8x8x8xf32>
    "tpu.trace_stop"() : () -> ()
    %cst_10 = arith.constant 0.176776692 : f32
    %17 = vector.broadcast %cst_10 : f32 to vector<8x8x8xf32>
    %18 = arith.mulf %16, %17 : vector<8x8x8xf32>
    %c0_11 = arith.constant 0 : index
    %c0_12 = arith.constant 0 : index
    %19 = vector.load %arg1[%c0_11, %c0_12] : memref<8x1xi32, #tpu.memory_space<vmem>>, vector<8x1xi32>
    %20 = tpu.iota {dimensions = array<i32: 2>} : vector<8x8x8xi32>
    %21 = vector.shape_cast %19 : vector<8x1xi32> to vector<8x1x1xi32>
    %22 = vector.broadcast %21 : vector<8x1x1xi32> to vector<8x8x8xi32>
    %23 = arith.cmpi slt, %20, %22 : vector<8x8x8xi32>
    %cst_13 = arith.constant -1.000000e+30 : f32
    %24 = vector.broadcast %cst_13 : f32 to vector<8x8x8xf32>
    %25 = arith.select %23, %18, %24 : vector<8x8x8xi1>, vector<8x8x8xf32>
    %cst_14 = arith.constant dense<0xFF800000> : vector<8x8xf32>
    %26 = vector.multi_reduction <maximumf>, %25, %cst_14 [2] : vector<8x8x8xf32> to vector<8x8xf32>
    %27 = vector.shape_cast %26 : vector<8x8xf32> to vector<8x8x1xf32>
    %28 = vector.broadcast %27 : vector<8x8x1xf32> to vector<8x8x8xf32>
    %29 = arith.subf %25, %28 : vector<8x8x8xf32>
    %30 = math.exp %29 : vector<8x8x8xf32>
    %cst_15 = arith.constant dense<0.000000e+00> : vector<8x8xf32>
    %31 = vector.multi_reduction <add>, %30, %cst_15 [2] : vector<8x8x8xf32> to vector<8x8xf32>
    %32 = vector.shape_cast %31 : vector<8x8xf32> to vector<8x8x1xf32>
    %33 = tpu.reciprocal %32 {approx = true} : vector<8x8x1xf32> -> vector<8x8x1xf32>
    %34 = arith.mulf %32, %33 : vector<8x8x1xf32>
    %cst_16 = arith.constant 2.000000e+00 : f32
    %35 = vector.broadcast %cst_16 : f32 to vector<8x8x1xf32>
    %36 = arith.subf %35, %34 : vector<8x8x1xf32>
    %37 = arith.mulf %33, %36 : vector<8x8x1xf32>
    %38 = vector.broadcast %37 : vector<8x8x1xf32> to vector<8x8x8xf32>
    %39 = arith.mulf %30, %38 : vector<8x8x8xf32>
    "tpu.trace_start"() <{level = 10 : i32, message = "bqk,bkd->bqd"}> : () -> ()
    %cst_17 = arith.constant dense<0.000000e+00> : vector<8x8x32xf32>
    %40 = tpu.matmul %39, %15, %cst_17 {dimension_numbers = #tpu.dot_dimension_numbers<[2], [1], [1], [2], [0, 0, 0, 1, 1, 2], [0], [0]>} : vector<8x8x8xf32>, vector<8x8x32xf32>, vector<8x8x32xf32> -> vector<8x8x32xf32>
    %cst_18 = arith.constant 0.000000e+00 : f32
    "tpu.trace_stop"() : () -> ()
    %41 = vector.broadcast %cst_18 : f32 to vector<8x8x120xf32>
    %42 = tpu.concatenate %39, %41 in 2 : vector<8x8x8xf32>, vector<8x8x120xf32> -> vector<8x8x128xf32>
    %c0_19 = arith.constant 0 : index
    %c0_20 = arith.constant 0 : index
    %c0_21 = arith.constant 0 : index
    %43 = vector.load %arg13[%c0_19, %c0_20, %c0_21] : memref<8x8x128xf32, #tpu.memory_space<vmem>>, vector<8x8x128xf32>
    tpu.vector_store %arg13[%c0_19, %c0_20, %c0_21], %42 {strides = array<i32>} : memref<8x8x128xf32, #tpu.memory_space<vmem>>, vector<8x8x128xf32>,
    %c0_22 = arith.constant 0 : index
    %c0_23 = arith.constant 0 : index
    %44 = vector.load %arg6[%c0_22, %c0_23] : memref<1x32xf32, #tpu.memory_space<vmem>>, vector<1x32xf32>
    %45 = vector.shape_cast %44 : vector<1x32xf32> to vector<1x1x32xf32>
    %46 = math.tanh %40 : vector<8x8x32xf32>
    %47 = vector.broadcast %45 : vector<1x1x32xf32> to vector<8x8x32xf32>
    %48 = arith.mulf %46, %47 : vector<8x8x32xf32>
    %cst_24 = arith.constant dense<0.000000e+00> : vector<8x8xf32>
    %49 = vector.multi_reduction <add>, %48, %cst_24 [2] : vector<8x8x32xf32> to vector<8x8xf32>
    %c0_25 = arith.constant 0 : index
    %c0_26 = arith.constant 0 : index
    %50 = vector.load %arg7[%c0_25, %c0_26] : memref<1x1xf32, #tpu.memory_space<vmem>>, vector<1x1xf32>
    %51 = vector.broadcast %50 : vector<1x1xf32> to vector<8x8xf32>
    %52 = arith.addf %49, %51 : vector<8x8xf32>
    %53 = tpu.iota {dimensions = array<i32: 1>} : vector<8x8xi32>
    %54 = vector.broadcast %19 : vector<8x1xi32> to vector<8x8xi32>
    %55 = arith.cmpi slt, %53, %54 : vector<8x8xi32>
    %cst_27 = arith.constant -1.000000e+30 : f32
    %56 = vector.broadcast %cst_27 : f32 to vector<8x8xf32>
    %57 = arith.select %55, %52, %56 : vector<8x8xi1>, vector<8x8xf32>
    %cst_28 = arith.constant dense<0xFF800000> : vector<8xf32>
    %58 = vector.multi_reduction <maximumf>, %57, %cst_28 [1] : vector<8x8xf32> to vector<8xf32>
    %59 = vector.shape_cast %58 : vector<8xf32> to vector<8x1xf32>
    %60 = vector.broadcast %59 : vector<8x1xf32> to vector<8x8xf32>
    %61 = arith.subf %57, %60 : vector<8x8xf32>
    %62 = math.exp %61 : vector<8x8xf32>
    %cst_29 = arith.constant dense<0.000000e+00> : vector<8xf32>
    %63 = vector.multi_reduction <add>, %62, %cst_29 [1] : vector<8x8xf32> to vector<8xf32>
    %64 = vector.shape_cast %63 : vector<8xf32> to vector<8x1xf32>
    %65 = tpu.reciprocal %64 {approx = true} : vector<8x1xf32> -> vector<8x1xf32>
    %66 = arith.mulf %64, %65 : vector<8x1xf32>
    %cst_30 = arith.constant 2.000000e+00 : f32
    %67 = vector.broadcast %cst_30 : f32 to vector<8x1xf32>
    %68 = arith.subf %67, %66 : vector<8x1xf32>
    %69 = arith.mulf %65, %68 : vector<8x1xf32>
    %70 = vector.broadcast %69 : vector<8x1xf32> to vector<8x8xf32>
    %71 = arith.mulf %62, %70 : vector<8x8xf32>
    %72 = vector.shape_cast %71 : vector<8x8xf32> to vector<8x8x1xf32>
    %73 = vector.broadcast %72 : vector<8x8x1xf32> to vector<8x8x32xf32>
    %74 = arith.mulf %73, %40 : vector<8x8x32xf32>
    %cst_31 = arith.constant dense<0.000000e+00> : vector<8x32xf32>
    %75 = vector.multi_reduction <add>, %74, %cst_31 [1] : vector<8x8x32xf32> to vector<8x32xf32>
    %c0_32 = arith.constant 0 : index
    %c0_33 = arith.constant 0 : index
    %76 = vector.load %arg8[%c0_32, %c0_33] : memref<32x16xf32, #tpu.memory_space<vmem>>, vector<32x16xf32>
    %cst_34 = arith.constant dense<0.000000e+00> : vector<8x16xf32>
    %77 = tpu.matmul %75, %76, %cst_34 {dimension_numbers = #tpu.dot_dimension_numbers<[1], [0], [0], [1], [0, 0, 1, 1], [], []>} : vector<8x32xf32>, vector<32x16xf32>, vector<8x16xf32> -> vector<8x16xf32>
    %c0_35 = arith.constant 0 : index
    %c0_36 = arith.constant 0 : index
    %78 = vector.load %arg9[%c0_35, %c0_36] : memref<1x16xf32, #tpu.memory_space<vmem>>, vector<1x16xf32>
    %79 = vector.broadcast %78 : vector<1x16xf32> to vector<8x16xf32>
    %80 = arith.addf %77, %79 : vector<8x16xf32>
    %cst_37 = arith.constant 0.000000e+00 : f32
    %81 = vector.broadcast %cst_37 : f32 to vector<8x16xf32>
    %82 = arith.maximumf %80, %81 : vector<8x16xf32>
    %c0_38 = arith.constant 0 : index
    %c0_39 = arith.constant 0 : index
    %83 = vector.load %arg10[%c0_38, %c0_39] : memref<16x3xf32, #tpu.memory_space<vmem>>, vector<16x3xf32>
    %cst_40 = arith.constant dense<0.000000e+00> : vector<8x3xf32>
    %84 = tpu.matmul %82, %83, %cst_40 {dimension_numbers = #tpu.dot_dimension_numbers<[1], [0], [0], [1], [0, 0, 1, 1], [], []>} : vector<8x16xf32>, vector<16x3xf32>, vector<8x3xf32> -> vector<8x3xf32>
    %c0_41 = arith.constant 0 : index
    %c0_42 = arith.constant 0 : index
    %85 = vector.load %arg11[%c0_41, %c0_42] : memref<1x3xf32, #tpu.memory_space<vmem>>, vector<1x3xf32>
    %86 = vector.broadcast %85 : vector<1x3xf32> to vector<8x3xf32>
    %87 = arith.addf %84, %86 : vector<8x3xf32>
    %cst_43 = arith.constant 0.000000e+00 : f32
    %88 = vector.broadcast %cst_43 : f32 to vector<8x117xf32>
    %89 = tpu.concatenate %87, %71, %88 in 1 : vector<8x3xf32>, vector<8x8xf32>, vector<8x117xf32> -> vector<8x128xf32>
    %c0_44 = arith.constant 0 : index
    %c0_45 = arith.constant 0 : index
    %90 = vector.load %arg12[%c0_44, %c0_45] : memref<8x128xf32, #tpu.memory_space<vmem>>, vector<8x128xf32>
    tpu.vector_store %arg12[%c0_44, %c0_45], %89 {strides = array<i32>} : memref<8x128xf32, #tpu.memory_space<vmem>>, vector<8x128xf32>,
    return
  }
  func.func @transform_0(%arg0: i32) -> (i32, i32) {
    %c0_i32 = arith.constant 0 : i32
    %c0_i32_0 = arith.constant 0 : i32
    return %arg0, %c0_i32 : i32, i32
  }
  func.func @transform_1(%arg0: i32) -> (i32, i32, i32) {
    %c0_i32 = arith.constant 0 : i32
    %c0_i32_0 = arith.constant 0 : i32
    %c0_i32_1 = arith.constant 0 : i32
    return %arg0, %c0_i32, %c0_i32_0 : i32, i32, i32
  }
  func.func @transform_2(%arg0: i32) -> (i32, i32) {
    %c0_i32 = arith.constant 0 : i32
    %c0_i32_0 = arith.constant 0 : i32
    %c0_i32_1 = arith.constant 0 : i32
    return %c0_i32, %c0_i32_0 : i32, i32
  }
  func.func @transform_3(%arg0: i32) -> (i32, i32) {
    %c0_i32 = arith.constant 0 : i32
    %c0_i32_0 = arith.constant 0 : i32
    %c0_i32_1 = arith.constant 0 : i32
    return %c0_i32, %c0_i32_0 : i32, i32
  }
  func.func @transform_4(%arg0: i32) -> (i32, i32) {
    %c0_i32 = arith.constant 0 : i32
    %c0_i32_0 = arith.constant 0 : i32
    %c0_i32_1 = arith.constant 0 : i32
    return %c0_i32, %c0_i32_0 : i32, i32
  }
  func.func @transform_5(%arg0: i32) -> (i32, i32) {
    %c0_i32 = arith.constant 0 : i32
    %c0_i32_0 = arith.constant 0 : i32
    %c0_i32_1 = arith.constant 0 : i32
    return %c0_i32, %c0_i32_0 : i32, i32
  }
  func.func @transform_6(%arg0: i32) -> (i32, i32) {
    %c0_i32 = arith.constant 0 : i32
    %c0_i32_0 = arith.constant 0 : i32
    %c0_i32_1 = arith.constant 0 : i32
    return %c0_i32, %c0_i32_0 : i32, i32
  }
  func.func @transform_7(%arg0: i32) -> (i32, i32) {
    %c0_i32 = arith.constant 0 : i32
    %c0_i32_0 = arith.constant 0 : i32
    %c0_i32_1 = arith.constant 0 : i32
    return %c0_i32, %c0_i32_0 : i32, i32
  }
  func.func @transform_8(%arg0: i32) -> (i32, i32) {
    %c0_i32 = arith.constant 0 : i32
    %c0_i32_0 = arith.constant 0 : i32
    %c0_i32_1 = arith.constant 0 : i32
    return %c0_i32, %c0_i32_0 : i32, i32
  }
  func.func @transform_9(%arg0: i32) -> (i32, i32) {
    %c0_i32 = arith.constant 0 : i32
    %c0_i32_0 = arith.constant 0 : i32
    %c0_i32_1 = arith.constant 0 : i32
    return %c0_i32, %c0_i32_0 : i32, i32
  }
  func.func @transform_10(%arg0: i32) -> (i32, i32) {
    %c0_i32 = arith.constant 0 : i32
    %c0_i32_0 = arith.constant 0 : i32
    %c0_i32_1 = arith.constant 0 : i32
    return %c0_i32, %c0_i32_0 : i32, i32
  }
  func.func @transform_11(%arg0: i32) -> (i32, i32) {
    %c0_i32 = arith.constant 0 : i32
    %c0_i32_0 = arith.constant 0 : i32
    return %arg0, %c0_i32 : i32, i32
  }
  func.func @transform_12(%arg0: i32) -> (i32, i32, i32) {
    %c0_i32 = arith.constant 0 : i32
    %c0_i32_0 = arith.constant 0 : i32
    %c0_i32_1 = arith.constant 0 : i32
    return %arg0, %c0_i32, %c0_i32_0 : i32, i32, i32
  }
}

</mosaic_0001>

<bundles_post_ra>
// kernel: tpu_custom_call.1
= control target key start
LH: loop header
LB: loop body
LE: loop exit
PB: predicated region body
PF: predicated region fallthrough
CT: control target
= control target key end

     0   :  { %s2466_s0 = inlined_call_operand.vmem [shape: s32[24,1], index: 0, kind: input, shape index: {}]   ;;  %s2467_s1 = inlined_call_operand.vmem [shape: f32[24,8,6], index: 1, kind: input, shape index: {}]   ;;  %s2468_s2 = inlined_call_operand.vmem [shape: f32[6,32], index: 2, kind: input, shape index: {}]   ;;  %s2469_s3 = inlined_call_operand.vmem [shape: f32[1,32], index: 3, kind: input, shape index: {}]   ;;  %s2470_s4 = inlined_call_operand.vmem [shape: f32[32,96], index: 4, kind: input, shape index: {}]   ;;  %s2471_s5 = inlined_call_operand.vmem [shape: f32[1,32], index: 5, kind: input, shape index: {}]   ;;  %s2472_s6 = inlined_call_operand.<no memory space> [shape: f32[1,1], index: 6, kind: input, shape index: {}]   ;;  %s2473_s7 = inlined_call_operand.vmem [shape: f32[32,16], index: 7, kind: input, shape index: {}]   ;;  %s2474_s8 = inlined_call_operand.vmem [shape: f32[1,16], index: 8, kind: input, shape index: {}]   ;;  %s2475_s9 = inlined_call_operand.vmem [shape: f32[16,3], index: 9, kind: input, shape index: {}]   ;;  %s2476_s10 = inlined_call_operand.vmem [shape: f32[1,3], index: 10, kind: input, shape index: {}]   ;;  %s2477_s11 = inlined_call_operand.hbm [shape: f32[24,128], index: 11, kind: output, shape index: {0}]   ;;  %s2478_s12 = inlined_call_operand.hbm [shape: f32[24,8,128], index: 12, kind: output, shape index: {1}]  }
   0x1   :  { %2479 = sst [smem:[#allocation9_spill]] %s2466_s0  ;;  %v18_v0 = vstv %s2472_s6 }
   0x2   :  { %2480 = sst [smem:[#allocation10_spill]] %s2467_s1  ;;  %19 = vst [vmem:[#allocation2] sm:$0x1] %v18_v0 }
   0x3   :  { %2481 = sst [smem:[#allocation11_spill]] %s2468_s2 }
   0x4   :  { %2482 = sst [smem:[#allocation12_spill]] %s2469_s3 }
   0x5   :  { %2483 = sst [smem:[#allocation13_spill]] %s2470_s4 }
   0x6   :  { %2484 = sst [smem:[#allocation14_spill]] %s2471_s5 }
   0x7   :  { %20 = vsyncpa [#allocation4], 0 }
   0x8   :  { %22 = vsyncpa [#allocation4 + $0x1], 0 }
   0x9   :  { %23 = vsyncpa [#allocation6], 0 }
   0xa   :  { %25 = vsyncpa [#allocation6 + $0x1], 0  ;;  %s2060_s23 = smov 0   ;;  %s2062_s24 = smov 0  }
   0xb   :  { %s2064_s25 = smov 0   ;;  %s2066_s26 = smov 0  }
   0xc LB: > { %s2081_s6 = sadd.s32 4294967295, %s1984_s26   ;;  %s1681_s27 = sadd.s32 4294967294, %s1984_s26   ;;  %s1984_s26 = sphi %s2066_s26, %s2496_s26   ;;  %s1980_s25 = sphi %s2064_s25, %s2495_s25   ;;  %s1976_s24 = sphi %s2062_s24, %s2494_s24   ;;  %s1972_s23 = sphi %s2060_s23, %s2493_s23  }
   0xd   : > { %s2085_s28 = sadd.s32 1, %s1984_s26   ;;  %s279_s29 = sadd.s32 1, %s1980_s25 }
   0xe   : > { %s276_s30 = ssub.s32 %s1984_s26, %s2085_s28  ;;  %p289_p0 = scmp.ne.s32.totalorder %s1980_s25, %s1976_s24 }
   0xf   : > { %p277_p1 = scmp.eq.s32.totalorder %s276_s30, 0  ;;  %p290_p2 = scmp.eq.s32.totalorder %s2081_s6, 2 }
  0x10   : > { %p295_p3 = scmp.ne.s32.totalorder %s1976_s24, %s1972_s23  ;;  %p296_p4 = scmp.eq.s32.totalorder %s1681_s27, 2 }
  0x11   : > { %s2096_s13 = scalar_select %p277_p1, %s1980_s25, %s279_s29  }
  0x12   : > { %p2098_p5 = por %p290_p2, %p289_p0  ;;  %p2102_p6 = por %p296_p4, %p295_p3 }
  0x13   : > { %p1684_p7 = scmp.ge.s32.totalorder %s1984_s26, 1  ;;  %p383_p8 = scmp.lt.s32.totalorder %s1984_s26, 4 }
  0x15   : > { %p384_p9 = pnand %p1684_p7, %p383_p8 }
  0x16   : > { %s2487_s2 = sld [smem:[#allocation11_spill]] (!%p384_p9)  ;;  %s2112_s18 = sshll.u32 (!%p384_p9), %s2081_s6, 3 }
  0x17   : > { %387 = sbr.rel (%p384_p9) target bundleno = 1821 (0x71d), region = 64  ;;  %p439_p10 = scmp.lt.s32.totalorder (!%p384_p9), %s2112_s18, 23 }
  0x18   : > { %s2488_s1 = sld [smem:[#allocation10_spill]] (!%p384_p9)  ;;  %p434_p11 = scmp.lt.s32.totalorder (!%p384_p9), %s2081_s6, 2 }
  0x19   : > { %s2489_s4 = sld [smem:[#allocation13_spill]] (!%p384_p9)  ;;  %s2277_s21 = sand.u32 (!%p384_p9), 1, %s1976_s24  }
  0x1a   : > { %s2490_s3 = sld [smem:[#allocation12_spill]] (!%p384_p9)  ;;  %s1686_s22 = sshll.u32 (!%p384_p9), %s2277_s21, 6 }
  0x1b   : > { %s2491_s0 = sld [smem:[#allocation9_spill]] (!%p384_p9) }
  0x1c   : > { %v453_v1 = vld [vmem:[%s2487_s2] sm:$0x3f]  ;;  %vm483_vm0 = vcmask 1045504   ;;  %s440_s19 = scalar_select %p439_p10, %s2112_s18, 23  ;;  %vm458_vm1 = vcmask 48128   ;;  %vm540_vm2 = vcmask 261120  }
  0x1d   : > { %1690 = vmatpush.msk.msra.mxu0 %vm483_vm0, %v453_v1  ;;  %s435_s29 = scalar_select %p434_p11, %s2081_s6, 2  ;;  %v1987_v50 = vmov 0   ;;  %vm888_vm4 = vcmask 64512   ;;  %vm1304_vm12 = vcmask 1041409   ;;  %vm1306_vm13 = vcmask 1042434  }
  0x1e   : > { %s1689_s20 = sshll.u32 %s440_s19, 3  ;;  %1792 = vset.pattern.permute.xlu0 %v1987_v50  ;;  %1793 = vset.pattern.permute.xlu1 %v1987_v50  ;;  %s2492_s5 = sld [smem:[#allocation14_spill]]  ;;  %vm1308_vm14 = vcmask 1043459   ;;  %vm1310_vm15 = vcmask 1044484   ;;  %vm1312_vm0 = vcmask 1045509  }
  0x1f   : > { %s442_s27 = scalar_lea.vmem %s2488_s1, %s1689_s20  ;;  %v539_v10 = vld [vmem:[%s2489_s4 + $0x18] sm:$0xff]  ;;  %v538_v11 = vld [vmem:[%s2489_s4 + $0x10] sm:$0xff]  ;;  %v537_v12 = vld [vmem:[%s2489_s4 + $0x8] sm:$0xff]  ;;  %s1986_s1 = smov 96   ;;  %1791 = vset.pattern.permute.xlu2 %v1987_v50 }
  0x20   : > { %v445_v2 = vld [vmem:[%s442_s27] sm:$0xff]  ;;  %v446_v3 = vld [vmem:[%s442_s27 + $0x8] sm:$0xff]  ;;  %v447_v4 = vld [vmem:[%s442_s27 + $0x10] sm:$0xff]  ;;  %577 = vmatpush.msra.mxu1 %v539_v10  ;;  %s1687_s30 = sshll.u32 %s435_s29, 3  ;;  %s1988_s20 = smov 64  }
  0x21   : > { %1691 = vmatmul.msk.f32.vlgmr.msra.gmra.mxu0 %vm458_vm1, %v445_v2  ;;  %v448_v5 = vld [vmem:[%s442_s27 + $0x18] sm:$0xff]  ;;  %v449_v6 = vld [vmem:[%s442_s27 + $0x20] sm:$0xff]  ;;  %v450_v7 = vld [vmem:[%s442_s27 + $0x28] sm:$0xff]  ;;  %s437_s19 = scalar_lea.vmem %s2491_s0, %s1687_s30  ;;  %s1989_s30 = smov 3  }
  0x22   : > { %v451_v8 = vld [vmem:[%s442_s27 + $0x30] sm:$0xff]  ;;  %v452_v9 = vld [vmem:[%s442_s27 + $0x38] sm:$0xff]  ;;  %578 = vmatpush.msra.mxu1 %v538_v11  ;;  %v536_v13 = vld [vmem:[%s2489_s4] sm:$0xff]  ;;  %s2283_s27 = scalar_lea.vmem [#allocation5], %s1686_s22  ;;  %s1740_s29 = sshll.u32 %s2081_s6, 6 }
  0x23   : > { %v1817_v14 = vld [vmem:[%s2490_s3] ss:$0 sm:$0xff]  ;;  %s1570_s0 = scalar_lea.hbm %s2478_s12, %s1740_s29  ;;  %s1910_s6 = scalar_lea.hbm %s2478_s12, 192 }
  0x24   : > { %579 = vmatpush.msra.mxu1 %v537_v12  ;;  %v2179_v47 = vld [vmem:[%s437_s19] sm:$0xff]  ;;  %s1573_s19 = sshll.u32 %s1570_s0, 4  ;;  %s1574_s19 = int_to_ptr.hbm [resolvable:$true] %s1573_s19 }
  0x25   : > { %v833_v48 = vrot.slane %v2179_v47, 1  ;;  %v834_v52 = vrot.slane %v2179_v47, 2  ;;  %v840_v54 = vperm.slane %v2179_v47, 0  ;;  %v836_v55 = vrot.slane %v2179_v47, 4  ;;  %s1904_s2 = sshra.s32 %s1574_s19, 4  ;;  %s1905_s2 = int_to_ptr.hbm [resolvable:$true] %s1904_s2 }
  0x26   : > { %580 = vmatpush.msra.mxu1 %v536_v13  ;;  %v838_v60 = vrot.slane %v2179_v47, 6  ;;  %v839_v62 = vrot.slane %v2179_v47, 7  ;;  %v835_v2 = vrot.slane %v2179_v47, 3  ;;  %s1906_s22 = scalar_lea.hbm %s1905_s2, 64  ;;  %p1911_p1 = scmp.lt.s32.totalorder %s1905_s2, %s2478_s12 }
  0x27   : > { %v841_v49 = vperm.slane %v833_v48, 0  ;;  %v842_v53 = vperm.slane %v834_v52, 0  ;;  %v844_v57 = vperm.slane %v836_v55, 0  ;;  %p1907_p12 = scmp.ne.s32.totalorder %s1905_s2, %s1906_s22  ;;  %p1912_p2 = scmp.lt.s32.totalorder %s1910_s6, %s1906_s22 }
  0x28   : > { %v846_v61 = vperm.slane %v838_v60, 0  ;;  %v847_v1 = vperm.slane %v839_v62, 0 }
  0x29   : > { %1692 = vmatmul.msk.f32.gmra.mxu0 %vm458_vm1, %v446_v3  ;;  %v843_v3 = vperm.slane %v835_v2, 0  ;;  %p1908_p13 = pnand %p1907_p12, %p2098_p5  ;;  %p1913_p3 = por %p1912_p2, %p1911_p1 }
  0x2b   : > { %p1909_p0 = pneg %p1908_p13 }
  0x2d   : > { %p1914_p4 = pnand %p1913_p3, %p1909_p0 }
  0x31   : > { %1693 = vmatmul.msk.f32.gmra.mxu0 %vm458_vm1, %v447_v4  ;;  %v837_v4 = vrot.slane %v2179_v47, 5 }
  0x39   : > { %1694 = vmatmul.msk.f32.gmra.mxu0 %vm458_vm1, %v448_v5  ;;  %v845_v5 = vperm.slane %v837_v4, 0 }
  0x41   : > { %1695 = vmatmul.msk.f32.gmra.mxu0 %vm458_vm1, %v449_v6 }
  0x49   : > { %1696 = vmatmul.msk.f32.gmra.mxu0 %vm458_vm1, %v450_v7 }
  0x51   : > { %1697 = vmatmul.msk.f32.gmra.mxu0 %vm458_vm1, %v451_v8  ;;  %v831_v8 = vlaneseq }
  0x59   : > { %1698 = vmatmul.msk.f32.gmra.mxu0 %vm458_vm1, %v452_v9  ;;  %v2214_v9 = vand.u32 127, %v831_v8  ;;  %vm1314_vm1 = vcmask 1046534  }
  0x9e   : > { %v504_v15 = vpop.f32.mrf.mxu0 }
  0x9f   : > { %v505_v16 = vadd.f32 %v1817_v14, %v504_v15 }
  0xa1   : > { %1822 = vtanh.f32 %v505_v16 }
  0xa6   : > { %v507_v17 = vpop.f32.mrf.mxu0 }
  0xa7   : > { %v1823_v18 = vpop.eup %1822  ;;  %v508_v19 = vadd.f32 %v1817_v14, %v507_v17 }
  0xa8   : > { %1699 = vmatmul.msk.f32.vlgmr.msra.gmra.mxu1 %vm540_vm2, %v1823_v18 }
  0xa9   : > { %1824 = vtanh.f32 %v508_v19 }
  0xae   : > { %v510_v20 = vpop.f32.mrf.mxu0 }
  0xaf   : > { %v1825_v21 = vpop.eup %1824  ;;  %v511_v22 = vadd.f32 %v1817_v14, %v510_v20 }
  0xb0   : > { %1700 = vmatmul.msk.f32.gmra.mxu1 %vm540_vm2, %v1825_v21 }
  0xb1   : > { %1826 = vtanh.f32 %v511_v22 }
  0xb6   : > { %v513_v23 = vpop.f32.mrf.mxu0 }
  0xb7   : > { %v1827_v24 = vpop.eup %1826  ;;  %v514_v25 = vadd.f32 %v1817_v14, %v513_v23 }
  0xb8   : > { %1701 = vmatmul.msk.f32.gmra.mxu1 %vm540_vm2, %v1827_v24 }
  0xb9   : > { %1828 = vtanh.f32 %v514_v25 }
  0xbe   : > { %v516_v26 = vpop.f32.mrf.mxu0 }
  0xbf   : > { %v1829_v27 = vpop.eup %1828  ;;  %v517_v28 = vadd.f32 %v1817_v14, %v516_v26 }
  0xc0   : > { %1702 = vmatmul.msk.f32.gmra.mxu1 %vm540_vm2, %v1829_v27 }
  0xc1   : > { %1830 = vtanh.f32 %v517_v28 }
  0xc6   : > { %v519_v29 = vpop.f32.mrf.mxu0 }
  0xc7   : > { %v1831_v30 = vpop.eup %1830  ;;  %v520_v31 = vadd.f32 %v1817_v14, %v519_v29 }
  0xc8   : > { %1703 = vmatmul.msk.f32.gmra.mxu1 %vm540_vm2, %v1831_v30 }
  0xc9   : > { %1832 = vtanh.f32 %v520_v31 }
  0xce   : > { %v522_v32 = vpop.f32.mrf.mxu0 }
  0xcf   : > { %v1833_v33 = vpop.eup %1832  ;;  %v523_v34 = vadd.f32 %v1817_v14, %v522_v32 }
  0xd0   : > { %1704 = vmatmul.msk.f32.gmra.mxu1 %vm540_vm2, %v1833_v33 }
  0xd1   : > { %1834 = vtanh.f32 %v523_v34 }
  0xd6   : > { %v525_v35 = vpop.f32.mrf.mxu0 }
  0xd7   : > { %v1835_v36 = vpop.eup %1834  ;;  %v526_v37 = vadd.f32 %v1817_v14, %v525_v35 }
  0xd8   : > { %1705 = vmatmul.msk.f32.gmra.mxu1 %vm540_vm2, %v1835_v36 }
  0xd9   : > { %1836 = vtanh.f32 %v526_v37 }
  0xdf   : > { %v1837_v38 = vpop.eup %1836 }
  0xe0   : > { %1706 = vmatmul.msk.f32.gmra.mxu1 %vm540_vm2, %v1837_v38 }
 0x125   : > { %v2150_v39 = vpop.f32.mrf.mxu1 }
 0x126   : > { %607 = vrot.lane.b32.xlu0 %v2150_v39, %s1986_s1 }
 0x12d   : > { %v2153_v40 = vpop.f32.mrf.mxu1 }
 0x12e   : > { %634 = vrot.lane.b32.xlu0 %v2153_v40, %s1986_s1 }
 0x135   : > { %v2156_v41 = vpop.f32.mrf.mxu1 }
 0x136   : > { %661 = vrot.lane.b32.xlu1 %v2156_v41, %s1986_s1 }
 0x13d   : > { %v2159_v42 = vpop.f32.mrf.mxu1 }
 0x13e   : > { %688 = vrot.lane.b32.xlu1 %v2159_v42, %s1986_s1 }
 0x145   : > { %v2162_v43 = vpop.f32.mrf.mxu1 }
 0x146   : > { %715 = vrot.lane.b32.xlu2 %v2162_v43, %s1986_s1 }
 0x14d   : > { %v2165_v44 = vpop.f32.mrf.mxu1 }
 0x14e   : > { %742 = vrot.lane.b32.xlu2 %v2165_v44, %s1986_s1 }
 0x155   : > { %v2168_v45 = vpop.f32.mrf.mxu1 }
 0x156   : > { %769 = vrot.lane.b32.xlu0 %v2168_v45, %s1986_s1  ;;  %849 = vperm.xlu2 %1791, %v840_v54  }
 0x15d   : > { %v2171_v46 = vpop.f32.mrf.mxu1 }
 0x15e   : > { %796 = vrot.lane.b32.xlu1 %v2171_v46, %s1986_s1  ;;  %852 = vperm.xlu0 %1792, %v841_v49  }
 0x15f   : > { %858 = vperm.xlu2 %1791, %v843_v3  }
 0x166   : > { %855 = vperm.xlu1 %1793, %v842_v53   ;;  %867 = vperm.xlu0 %1792, %v846_v61  }
 0x167   : > { %864 = vperm.xlu2 %1791, %v845_v5  }
 0x16e   : > { %861 = vperm.xlu1 %1793, %v844_v57  }
 0x176   : > { %870 = vperm.xlu1 %1793, %v847_v1  }
 0x198   : > { %v608_v51 = vpop.permute.xlu0 %607 }
 0x199   : > { %1707 = vmatpush.xpose.msk.msra.mxu2 %vm540_vm2, %v608_v51 }
 0x19c   : > { %1708 = vmatmul.msk.f32.vlgmr.msra.gmra.mxu2 %vm540_vm2, %v2150_v39 }
 0x1a0   : > { %v635_v56 = vpop.permute.xlu0 %634  ;;  %v716_v58 = vpop.permute.xlu2 %715 }
 0x1a1   : > { %1709 = vmatpush.xpose.msk.msra.mxu3 %vm540_vm2, %v635_v56 }
 0x1a4   : > { %1710 = vmatmul.msk.f32.vlgmr.msra.gmra.mxu3 %vm540_vm2, %v2153_v40 }
 0x1a8   : > { %v662_v59 = vpop.permute.xlu1 %661  ;;  %v743_v0 = vpop.permute.xlu2 %742 }
 0x1a9   : > { %1711 = vmatpush.xpose.msk.msrb.mxu2 %vm540_vm2, %v662_v59  ;;  %v1794_v59 = vpack.i.bf16 %v2153_v40, %v2150_v39 }
 0x1ac   : > { %1712 = vmatmul.msk.f32.vlgmr.msrb.gmra.mxu2 %vm540_vm2, %v2156_v41 }
 0x1ad   : > { %1715 = vmatpush.xpose.msk.msra.mxu2 %vm540_vm2, %v716_v58 }
 0x1b0   : > { %v689_v63 = vpop.permute.xlu1 %688  ;;  %v850_v10 = vpop.permute.xlu2 %849 }
 0x1b1   : > { %1713 = vmatpush.xpose.msk.msrb.mxu3 %vm540_vm2, %v689_v63  ;;  %vm872_vm3 = vcmp.lt.s32.totalorder %v2214_v9, %v850_v10 }
 0x1b4   : > { %1714 = vmatmul.msk.f32.vlgmr.msrb.gmra.mxu3 %vm540_vm2, %v2159_v42  ;;  %1716 = vmatmul.msk.f32.vlgmr.msra.gmra.mxu2 %vm540_vm2, %v2162_v43 }
 0x1b5   : > { %1717 = vmatpush.xpose.msk.msra.mxu3 %vm540_vm2, %v743_v0 }
 0x1b9   : > { %v859_v25 = vpop.permute.xlu2 %858 }
 0x1ba   : > { %vm875_vm7 = vcmp.lt.s32.totalorder %v2214_v9, %v859_v25 }
 0x1bc   : > { %1718 = vmatmul.msk.f32.vlgmr.msra.gmra.mxu3 %vm540_vm2, %v2165_v44 }
 0x1c1   : > { %v865_v33 = vpop.permute.xlu2 %864 }
 0x1c2   : > { %vm877_vm9 = vcmp.lt.s32.totalorder %v2214_v9, %v865_v33 }
 0x1c8   : > { %v770_v6 = vpop.permute.xlu0 %769 }
 0x1c9   : > { %1719 = vmatpush.xpose.msk.msrb.mxu2 %vm540_vm2, %v770_v6 }
 0x1cc   : > { %1720 = vmatmul.msk.f32.vlgmr.msrb.gmra.mxu2 %vm540_vm2, %v2168_v45 }
 0x1d0   : > { %v797_v7 = vpop.permute.xlu1 %796  ;;  %v853_v15 = vpop.permute.xlu0 %852 }
 0x1d1   : > { %1721 = vmatpush.xpose.msk.msrb.mxu3 %vm540_vm2, %v797_v7  ;;  %vm873_vm5 = vcmp.lt.s32.totalorder %v2214_v9, %v853_v15 }
 0x1d4   : > { %1722 = vmatmul.msk.f32.vlgmr.msrb.gmra.mxu3 %vm540_vm2, %v2171_v46 }
 0x1d8   : > { %v856_v20 = vpop.permute.xlu1 %855  ;;  %v868_v49 = vpop.permute.xlu0 %867 }
 0x1d9   : > { %vm874_vm6 = vcmp.lt.s32.totalorder %v2214_v9, %v856_v20  ;;  %vm878_vm10 = vcmp.lt.s32.totalorder %v2214_v9, %v868_v49  ;;  %v1809_v49 = vpack.i.bf16 %v2171_v46, %v2168_v45 }
 0x1e0   : > { %v862_v29 = vpop.permute.xlu1 %861 }
 0x1e1   : > { %vm876_vm8 = vcmp.lt.s32.totalorder %v2214_v9, %v862_v29  ;;  %v1818_v29 = vld [vmem:[#allocation2] ss:$0 sm:$0xff] }
 0x1e8   : > { %v871_v54 = vpop.permute.xlu1 %870 }
 0x1e9   : > { %vm879_vm11 = vcmp.lt.s32.totalorder %v2214_v9, %v871_v54 }
 0x21f   : > { %v630_v11 = vpop.f32.mrf.mxu2 }
 0x220   : > { %v822_v12 = vmul.f32 0.17677669, %v630_v11 }
 0x222   : > { %v880_v13 = vsel %vm872_vm3, %v822_v12, -1e+30  ;;  %vm1316_vm3 = vcmask 1047559  }
 0x223   : > { %v889_v14 = vsel %vm888_vm4, %v880_v13, -inf }
 0x224   : > { %890 = vmax.xlane.f32.xlu2 %v889_v14 }
 0x227   : > { %v657_v16 = vpop.f32.mrf.mxu3 }
 0x228   : > { %v823_v17 = vmul.f32 0.17677669, %v657_v16 }
 0x22a   : > { %v881_v18 = vsel %vm873_vm5, %v823_v17, -1e+30 }
 0x22b   : > { %v892_v19 = vsel %vm888_vm4, %v881_v18, -inf }
 0x22c   : > { %893 = vmax.xlane.f32.xlu0 %v892_v19 }
 0x22f   : > { %v684_v21 = vpop.f32.mrf.mxu2 }
 0x230   : > { %v824_v22 = vmul.f32 0.17677669, %v684_v21 }
 0x232   : > { %v882_v23 = vsel %vm874_vm6, %v824_v22, -1e+30 }
 0x233   : > { %v895_v24 = vsel %vm888_vm4, %v882_v23, -inf }
 0x234   : > { %896 = vmax.xlane.f32.xlu1 %v895_v24  ;;  %v1804_v24 = vpack.i.bf16 %v2165_v44, %v2162_v43 }
 0x237   : > { %v711_v26 = vpop.f32.mrf.mxu3  ;;  %v738_v28 = vpop.f32.mrf.mxu2 }
 0x238   : > { %v825_v27 = vmul.f32 0.17677669, %v711_v26  ;;  %v826_v32 = vmul.f32 0.17677669, %v738_v28 }
 0x23a   : > { %v883_v30 = vsel %vm875_vm7, %v825_v27, -1e+30  ;;  %v884_v36 = vsel %vm876_vm8, %v826_v32, -1e+30 }
 0x23b   : > { %v898_v31 = vsel %vm888_vm4, %v883_v30, -inf  ;;  %v901_v38 = vsel %vm888_vm4, %v884_v36, -inf }
 0x23c   : > { %899 = vmax.xlane.f32.xlu2 %v898_v31 }
 0x23f   : > { %v765_v34 = vpop.f32.mrf.mxu3 }
 0x240   : > { %v827_v35 = vmul.f32 0.17677669, %v765_v34 }
 0x242   : > { %v885_v37 = vsel %vm877_vm9, %v827_v35, -1e+30  ;;  %v1799_v35 = vpack.i.bf16 %v2159_v42, %v2156_v41 }
 0x243   : > { %v904_v48 = vsel %vm888_vm4, %v885_v37, -inf }
 0x244   : > { %902 = vmax.xlane.f32.xlu2 %v901_v38  ;;  %905 = vmax.xlane.f32.xlu0 %v904_v48 }
 0x24f   : > { %v792_v50 = vpop.f32.mrf.mxu2 }
 0x250   : > { %v828_v51 = vmul.f32 0.17677669, %v792_v50 }
 0x252   : > { %v886_v52 = vsel %vm878_vm10, %v828_v51, -1e+30 }
 0x253   : > { %v907_v53 = vsel %vm888_vm4, %v886_v52, -inf }
 0x254   : > { %908 = vmax.xlane.f32.xlu1 %v907_v53 }
 0x257   : > { %v819_v55 = vpop.f32.mrf.mxu3 }
 0x258   : > { %v829_v56 = vmul.f32 0.17677669, %v819_v55 }
 0x25a   : > { %v887_v57 = vsel %vm879_vm11, %v829_v56, -1e+30 }
 0x25b   : > { %v910_v58 = vsel %vm888_vm4, %v887_v57, -inf }
 0x25c   : > { %911 = vmax.xlane.f32.xlu2 %v910_v58 }
 0x26d   : > { %1795 = vrot.lane.b32.xlu1 %v1794_v59, %s1988_s20 }
 0x297   : > { %v891_v60 = vpop.xlane.xlu2 %890 }
 0x298   : > { %v913_v61 = vsub.f32 %v880_v13, %v891_v60 }
 0x29a   : > { %v921_v62 = vmul.f32 1.442695, %v913_v61 }
 0x29c   : > { %1838 = vpow2.f32 %v921_v62 }
 0x29f   : > { %v894_v63 = vpop.xlane.xlu0 %893 }
 0x2a0   : > { %v914_v0 = vsub.f32 %v881_v18, %v894_v63 }
 0x2a2   : > { %v2235_v1 = vpop.eup %1838  ;;  %v923_v2 = vmul.f32 1.442695, %v914_v0 }
 0x2a3   : > { %v937_v3 = vsel %vm888_vm4, %v2235_v1, 0.0 }
 0x2a4   : > { %1840 = vpow2.f32 %v923_v2  ;;  %938 = vadd.xlane.f32.xlu0 %v937_v3 }
 0x2a7   : > { %v897_v4 = vpop.xlane.xlu1 %896 }
 0x2a8   : > { %v915_v5 = vsub.f32 %v882_v23, %v897_v4 }
 0x2aa   : > { %v2239_v39 = vpop.eup %1840  ;;  %v925_v40 = vmul.f32 1.442695, %v915_v5 }
 0x2ab   : > { %v940_v6 = vsel %vm888_vm4, %v2239_v39, 0.0 }
 0x2ac   : > { %1842 = vpow2.f32 %v925_v40  ;;  %941 = vadd.xlane.f32.xlu1 %v940_v6 }
 0x2af   : > { %v900_v7 = vpop.xlane.xlu2 %899 }
 0x2b0   : > { %v916_v10 = vsub.f32 %v883_v30, %v900_v7 }
 0x2b2   : > { %v2243_v11 = vpop.eup %1842  ;;  %v927_v12 = vmul.f32 1.442695, %v916_v10 }
 0x2b3   : > { %v943_v13 = vsel %vm888_vm4, %v2243_v11, 0.0 }
 0x2b4   : > { %1844 = vpow2.f32 %v927_v12  ;;  %944 = vadd.xlane.f32.xlu2 %v943_v13 }
 0x2b7   : > { %v903_v14 = vpop.xlane.xlu2 %902  ;;  %v906_v15 = vpop.xlane.xlu0 %905 }
 0x2b8   : > { %v917_v16 = vsub.f32 %v884_v36, %v903_v14  ;;  %v918_v17 = vsub.f32 %v885_v37, %v906_v15 }
 0x2ba   : > { %v2247_v18 = vpop.eup %1844  ;;  %v929_v19 = vmul.f32 1.442695, %v917_v16  ;;  %v931_v20 = vmul.f32 1.442695, %v918_v17 }
 0x2bb   : > { %v946_v21 = vsel %vm888_vm4, %v2247_v18, 0.0 }
 0x2bc   : > { %1846 = vpow2.f32 %v929_v19  ;;  %947 = vadd.xlane.f32.xlu0 %v946_v21 }
 0x2bd   : > { %1848 = vpow2.f32 %v931_v20 }
 0x2c2   : > { %v2251_v22 = vpop.eup %1846 }
 0x2c3   : > { %v2253_v23 = vpop.eup %1848  ;;  %v949_v25 = vsel %vm888_vm4, %v2251_v22, 0.0 }
 0x2c4   : > { %950 = vadd.xlane.f32.xlu2 %v949_v25  ;;  %v952_v26 = vsel %vm888_vm4, %v2253_v23, 0.0 }
 0x2c5   : > { %953 = vadd.xlane.f32.xlu0 %v952_v26  ;;  %1805 = vrot.lane.b32.xlu1 %v1804_v24, %s1988_s20 }
 0x2c7   : > { %v909_v27 = vpop.xlane.xlu1 %908 }
 0x2c8   : > { %v919_v28 = vsub.f32 %v886_v52, %v909_v27 }
 0x2ca   : > { %v933_v30 = vmul.f32 1.442695, %v919_v28 }
 0x2cc   : > { %1850 = vpow2.f32 %v933_v30 }
 0x2cd   : > { %1273 = vperm.xlu1 %1793, %v1818_v29  }
 0x2cf   : > { %v912_v31 = vpop.xlane.xlu2 %911 }
 0x2d0   : > { %v920_v32 = vsub.f32 %v887_v57, %v912_v31 }
 0x2d2   : > { %v2262_v33 = vpop.eup %1850  ;;  %v935_v43 = vmul.f32 1.442695, %v920_v32 }
 0x2d3   : > { %v955_v44 = vsel %vm888_vm4, %v2262_v33, 0.0 }
 0x2d4   : > { %1852 = vpow2.f32 %v935_v43  ;;  %956 = vadd.xlane.f32.xlu0 %v955_v44 }
 0x2da   : > { %v2266_v34 = vpop.eup %1852 }
 0x2db   : > { %v958_v36 = vsel %vm888_vm4, %v2266_v34, 0.0 }
 0x2dc   : > { %1800 = vrot.lane.b32.xlu2 %v1799_v35, %s1988_s20  ;;  %959 = vadd.xlane.f32.xlu0 %v958_v36 }
 0x2df   : > { %v1796_v37 = vpop.permute.xlu1 %1795 }
 0x2e0   : > { %v1798_v38 = vunpack.i.h.bf16 %v1796_v37  ;;  %v1797_v48 = vunpack.i.l.bf16 %v1796_v37 }
 0x2e2   : > { %1022 = vmatpush.msra.mxu2 %v1797_v48  ;;  %1048 = vmatpush.msra.mxu3 %v1798_v38 }
 0x2f0   : > { %1810 = vrot.lane.b32.xlu0 %v1809_v49, %s1988_s20  ;;  %s1545_s20 = scalar_lea.sflag [#allocation6], %s2277_s21 }
 0x317   : > { %v939_v50 = vpop.xlane.xlu0 %938 }
 0x318   : > { %1854 = vrcp.f32 %v939_v50 }
 0x31e   : > { %v1855_v41 = vpop.eup %1854 }
 0x31f   : > { %v969_v42 = vmul.f32 %v1855_v41, %v939_v50  ;;  %v942_v51 = vpop.xlane.xlu1 %941 }
 0x320   : > { %1856 = vrcp.f32 %v942_v51 }
 0x321   : > { %v977_v52 = vsub.f32 2.0, %v969_v42 }
 0x323   : > { %v985_v53 = vmul.f32 %v1855_v41, %v977_v52 }
 0x325   : > { %v993_v54 = vmul.f32 %v2235_v1, %v985_v53 }
 0x326   : > { %v1857_v55 = vpop.eup %1856 }
 0x327   : > { %v1209_v56 = vsel %vm888_vm4, %v993_v54, 0.0  ;;  %v970_v45 = vmul.f32 %v1857_v55, %v942_v51  ;;  %v945_v46 = vpop.xlane.xlu2 %944  ;;  %1723 = vmatmul.msk.f32.vlgmr.msra.gmra.mxu2 %vm888_vm4, %v993_v54 }
 0x328   : > { %1858 = vrcp.f32 %v945_v46  ;;  %1217 = vst [vmem:[%s2283_s27] sm:$0xff] %v1209_v56 }
 0x329   : > { %v978_v57 = vsub.f32 2.0, %v970_v45 }
 0x32b   : > { %v986_v58 = vmul.f32 %v1857_v55, %v978_v57 }
 0x32d   : > { %v994_v59 = vmul.f32 %v2239_v39, %v986_v58 }
 0x32e   : > { %v1859_v60 = vpop.eup %1858 }
 0x32f   : > { %v1210_v61 = vsel %vm888_vm4, %v994_v59, 0.0  ;;  %v971_v62 = vmul.f32 %v1859_v60, %v945_v46  ;;  %1724 = vmatmul.msk.f32.vlgmr.msra.gmra.mxu3 %vm888_vm4, %v994_v59  ;;  %v948_v63 = vpop.xlane.xlu0 %947 }
 0x330   : > { %1860 = vrcp.f32 %v948_v63  ;;  %1218 = vst [vmem:[%s2283_s27 + $0x8] sm:$0xff] %v1210_v61 }
 0x331   : > { %v979_v0 = vsub.f32 2.0, %v971_v62 }
 0x333   : > { %v987_v1 = vmul.f32 %v1859_v60, %v979_v0 }
 0x335   : > { %v995_v2 = vmul.f32 %v2243_v11, %v987_v1 }
 0x336   : > { %v1861_v3 = vpop.eup %1860 }
 0x337   : > { %v1211_v4 = vsel %vm888_vm4, %v995_v2, 0.0  ;;  %v972_v5 = vmul.f32 %v1861_v3, %v948_v63  ;;  %v951_v40 = vpop.xlane.xlu2 %950  ;;  %v1806_v11 = vpop.permute.xlu1 %1805 }
 0x338   : > { %1862 = vrcp.f32 %v951_v40  ;;  %v954_v39 = vpop.xlane.xlu0 %953  ;;  %1219 = vst [vmem:[%s2283_s27 + $0x10] sm:$0xff] %v1211_v4  ;;  %v1808_v24 = vunpack.i.h.bf16 %v1806_v11  ;;  %v1807_v25 = vunpack.i.l.bf16 %v1806_v11 }
 0x339   : > { %v980_v6 = vsub.f32 2.0, %v972_v5  ;;  %1864 = vrcp.f32 %v954_v39 }
 0x33b   : > { %v988_v7 = vmul.f32 %v1861_v3, %v980_v6 }
 0x33d   : > { %v996_v10 = vmul.f32 %v2247_v18, %v988_v7 }
 0x33e   : > { %v1863_v12 = vpop.eup %1862 }
 0x33f   : > { %v1865_v13 = vpop.eup %1864  ;;  %v1212_v14 = vsel %vm888_vm4, %v996_v10, 0.0  ;;  %v973_v15 = vmul.f32 %v1863_v12, %v951_v40  ;;  %v1801_v16 = vpop.permute.xlu2 %1800 }
 0x340   : > { %v974_v17 = vmul.f32 %v1865_v13, %v954_v39  ;;  %v1803_v19 = vunpack.i.h.bf16 %v1801_v16  ;;  %v1802_v20 = vunpack.i.l.bf16 %v1801_v16  ;;  %1220 = vst [vmem:[%s2283_s27 + $0x18] sm:$0xff] %v1212_v14 }
 0x341   : > { %v981_v21 = vsub.f32 2.0, %v973_v15 }
 0x342   : > { %v982_v26 = vsub.f32 2.0, %v974_v17  ;;  %1074 = vmatpush.msrb.mxu2 %v1802_v20  ;;  %1100 = vmatpush.msrb.mxu3 %v1803_v19 }
 0x343   : > { %v989_v18 = vmul.f32 %v1863_v12, %v981_v21  ;;  %1725 = vmatmul.msk.f32.vlgmr.msrb.gmra.mxu2 %vm888_vm4, %v995_v2  ;;  %1726 = vmatmul.msk.f32.vlgmr.msrb.gmra.mxu3 %vm888_vm4, %v996_v10  ;;  %v1274_v21 = vpop.permute.xlu1 %1273 }
 0x344   : > { %v990_v27 = vmul.f32 %v1865_v13, %v982_v26  ;;  %1126 = vmatpush.msra.mxu2 %v1807_v25  ;;  %1152 = vmatpush.msra.mxu3 %v1808_v24 }
 0x345   : > { %v997_v28 = vmul.f32 %v2251_v22, %v989_v18 }
 0x346   : > { %v998_v29 = vmul.f32 %v2253_v23, %v990_v27 }
 0x347   : > { %v1213_v30 = vsel %vm888_vm4, %v997_v28, 0.0  ;;  %v957_v31 = vpop.xlane.xlu0 %956 }
 0x348   : > { %v1214_v32 = vsel %vm888_vm4, %v998_v29, 0.0  ;;  %1866 = vrcp.f32 %v957_v31  ;;  %1221 = vst [vmem:[%s2283_s27 + $0x20] sm:$0xff] %v1213_v30 }
 0x349   : > { %1222 = vst [vmem:[%s2283_s27 + $0x28] sm:$0xff] %v1214_v32 }
 0x34b   : > { %1727 = vmatmul.msk.f32.vlgmr.msra.gmra.mxu2 %vm888_vm4, %v997_v28  ;;  %1728 = vmatmul.msk.f32.vlgmr.msra.gmra.mxu3 %vm888_vm4, %v998_v29 }
 0x34e   : > { %v1867_v43 = vpop.eup %1866 }
 0x34f   : > { %v975_v44 = vmul.f32 %v1867_v43, %v957_v31  ;;  %v960_v35 = vpop.xlane.xlu0 %959 }
 0x350   : > { %1868 = vrcp.f32 %v960_v35 }
 0x351   : > { %v983_v22 = vsub.f32 2.0, %v975_v44 }
 0x353   : > { %v991_v23 = vmul.f32 %v1867_v43, %v983_v22 }
 0x355   : > { %v999_v36 = vmul.f32 %v2262_v33, %v991_v23 }
 0x356   : > { %v1869_v37 = vpop.eup %1868 }
 0x357   : > { %v1215_v38 = vsel %vm888_vm4, %v999_v36, 0.0  ;;  %v976_v48 = vmul.f32 %v1869_v37, %v960_v35 }
 0x358   : > { %1223 = vst [vmem:[%s2283_s27 + $0x30] sm:$0xff] %v1215_v38 }
 0x359   : > { %v984_v49 = vsub.f32 2.0, %v976_v48 }
 0x35b   : > { %v992_v50 = vmul.f32 %v1869_v37, %v984_v49 }
 0x35d   : > { %v1000_v41 = vmul.f32 %v2266_v34, %v992_v50  ;;  %v1819_v34 = vld [vmem:[%s2492_s5] ss:$0 sm:$0xff] }
 0x35f   : > { %v1216_v42 = vsel %vm888_vm4, %v1000_v41, 0.0 }
 0x360   : > { %1224 = vst [vmem:[%s2283_s27 + $0x38] sm:$0xff] %v1216_v42 }
 0x362   : > { %v1811_v51 = vpop.permute.xlu0 %1810 }
 0x363   : > { %v1813_v52 = vunpack.i.h.bf16 %v1811_v51  ;;  %v1812_v53 = vunpack.i.l.bf16 %v1811_v51 }
 0x365   : > { %1178 = vmatpush.msrb.mxu2 %v1812_v53  ;;  %1204 = vmatpush.msrb.mxu3 %v1813_v52 }
 0x366   : > { %1729 = vmatmul.msk.f32.vlgmr.msrb.gmra.mxu2 %vm888_vm4, %v999_v36  ;;  %1730 = vmatmul.msk.f32.vlgmr.msrb.gmra.mxu3 %vm888_vm4, %v1000_v41 }
 0x3aa   : > { %v2314_v33 = vpop.f32.mrf.mxu2 }
 0x3ab   : > { %1870 = vtanh.f32 %v2314_v33 }
 0x3b1   : > { %v1871_v54 = vpop.eup %1870 }
 0x3b2   : > { %v2320_v55 = vpop.f32.mrf.mxu3  ;;  %v1237_v56 = vmul.f32 %v1871_v54, %v1819_v34 }
 0x3b3   : > { %1872 = vtanh.f32 %v2320_v55 }
 0x3b4   : > { %v1245_v45 = vsel %vm540_vm2, %v1237_v56, 0.0 }
 0x3b5   : > { %1246 = vadd.xlane.f32.xlu1 %v1245_v45 }
 0x3b9   : > { %v1873_v46 = vpop.eup %1872 }
 0x3ba   : > { %v1238_v57 = vmul.f32 %v1873_v46, %v1819_v34 }
 0x3bc   : > { %v1248_v58 = vsel %vm540_vm2, %v1238_v57, 0.0 }
 0x3bd   : > { %1249 = vadd.xlane.f32.xlu2 %v1248_v58 }
 0x3c6   : > { %v2325_v59 = vpop.f32.mrf.mxu2  ;;  %v2327_v60 = vpop.f32.mrf.mxu3 }
 0x3c7   : > { %1874 = vtanh.f32 %v2325_v59 }
 0x3c8   : > { %1876 = vtanh.f32 %v2327_v60 }
 0x3cd   : > { %v1875_v61 = vpop.eup %1874 }
 0x3ce   : > { %v1877_v62 = vpop.eup %1876  ;;  %v2331_v63 = vpop.f32.mrf.mxu2  ;;  %v1239_v1 = vmul.f32 %v1875_v61, %v1819_v34 }
 0x3cf   : > { %v2333_v0 = vpop.f32.mrf.mxu3  ;;  %1878 = vtanh.f32 %v2331_v63  ;;  %v1240_v2 = vmul.f32 %v1877_v62, %v1819_v34 }
 0x3d0   : > { %1880 = vtanh.f32 %v2333_v0  ;;  %v1251_v3 = vsel %vm540_vm2, %v1239_v1, 0.0 }
 0x3d1   : > { %1252 = vadd.xlane.f32.xlu0 %v1251_v3  ;;  %v1254_v4 = vsel %vm540_vm2, %v1240_v2, 0.0  ;;  %v1336_v3 = vshrl.u32 %v831_v8, 7 }
 0x3d2   : > { %1255 = vadd.xlane.f32.xlu2 %v1254_v4 }
 0x3d3   : > { %1814 = vset.pattern.permute.xlu2 %v1336_v3  ;;  %1816 = vset.pattern.permute.xlu1 %v1336_v3 }
 0x3d5   : > { %v1879_v5 = vpop.eup %1878 }
 0x3d6   : > { %v1881_v40 = vpop.eup %1880  ;;  %v1241_v39 = vmul.f32 %v1879_v5, %v1819_v34 }
 0x3d7   : > { %v1242_v6 = vmul.f32 %v1881_v40, %v1819_v34 }
 0x3d8   : > { %v1257_v7 = vsel %vm540_vm2, %v1241_v39, 0.0 }
 0x3d9   : > { %v1260_v10 = vsel %vm540_vm2, %v1242_v6, 0.0 }
 0x3da   : > { %1258 = vadd.xlane.f32.xlu2 %v1257_v7  ;;  %1261 = vadd.xlane.f32.xlu0 %v1260_v10 }
 0x3e9   : > { %v2341_v12 = vpop.f32.mrf.mxu2  ;;  %v2343_v13 = vpop.f32.mrf.mxu3 }
 0x3ea   : > { %1882 = vtanh.f32 %v2341_v12 }
 0x3eb   : > { %1884 = vtanh.f32 %v2343_v13 }
 0x3ee   : > { %1285 = vperm.xlu0 %1792, %v2179_v47  }
 0x3f0   : > { %v1883_v14 = vpop.eup %1882 }
 0x3f1   : > { %v1885_v15 = vpop.eup %1884  ;;  %v1243_v11 = vmul.f32 %v1883_v14, %v1819_v34 }
 0x3f2   : > { %v1244_v16 = vmul.f32 %v1885_v15, %v1819_v34 }
 0x3f3   : > { %v1263_v17 = vsel %vm540_vm2, %v1243_v11, 0.0 }
 0x3f4   : > { %v1266_v19 = vsel %vm540_vm2, %v1244_v16, 0.0  ;;  %1264 = vadd.xlane.f32.xlu2 %v1263_v17 }
 0x3f5   : > { %1267 = vadd.xlane.f32.xlu1 %v1266_v19  ;;  %v1457_v19 = vld [vmem:[%s2473_s7 + $0x18] sm:$0xff] }
 0x3f6   : > { %1815 = vset.pattern.permute.xlu0 %v1336_v3  ;;  %1491 = vmatpush.msrb.mxu0 %v1457_v19 }
 0x428   : > { %v1247_v26 = vpop.xlane.xlu1 %1246 }
 0x429   : > { %v1276_v28 = vadd.f32 %v1274_v21, %v1247_v26 }
 0x42b   : > { %v1296_v44 = vperm.slane %v1276_v28, %v2214_v9 }
 0x430   : > { %v1250_v20 = vpop.xlane.xlu2 %1249 }
 0x431   : > { %v1277_v18 = vadd.f32 %v1274_v21, %v1250_v20  ;;  %v1456_v20 = vld [vmem:[%s2473_s7 + $0x10] sm:$0xff] }
 0x432   : > { %1492 = vmatpush.msrb.mxu0 %v1456_v20 }
 0x433   : > { %v1297_v47 = vperm.slane %v1277_v18, %v2214_v9 }
 0x435   : > { %v1305_v35 = vsel %vm1304_vm12, %v1297_v47, %v1296_v44  ;;  %v1454_v44 = vld [vmem:[%s2473_s7] sm:$0xff] }
 0x444   : > { %v1253_v25 = vpop.xlane.xlu0 %1252 }
 0x445   : > { %v1256_v24 = vpop.xlane.xlu2 %1255  ;;  %v1278_v27 = vadd.f32 %v1274_v21, %v1253_v25 }
 0x446   : > { %v1279_v30 = vadd.f32 %v1274_v21, %v1256_v24  ;;  %v1455_v24 = vld [vmem:[%s2473_s7 + $0x8] sm:$0xff] }
 0x447   : > { %v1298_v31 = vperm.slane %v1278_v27, %v2214_v9  ;;  %1493 = vmatpush.msrb.mxu0 %v1455_v24 }
 0x448   : > { %v1299_v22 = vperm.slane %v1279_v30, %v2214_v9 }
 0x449   : > { %v1307_v36 = vsel %vm1306_vm13, %v1298_v31, %v1305_v35  ;;  %1494 = vmatpush.msrb.mxu0 %v1454_v44 }
 0x44a   : > { %v1309_v38 = vsel %vm1308_vm14, %v1299_v22, %v1307_v36 }
 0x44d   : > { %v1259_v29 = vpop.xlane.xlu2 %1258  ;;  %v1262_v43 = vpop.xlane.xlu0 %1261 }
 0x44e   : > { %v1280_v32 = vadd.f32 %v1274_v21, %v1259_v29  ;;  %v1281_v23 = vadd.f32 %v1274_v21, %v1262_v43 }
 0x450   : > { %v1300_v37 = vperm.slane %v1280_v32, %v2214_v9  ;;  %v1301_v48 = vperm.slane %v1281_v23, %v2214_v9 }
 0x452   : > { %v1311_v50 = vsel %vm1310_vm15, %v1300_v37, %v1309_v38 }
 0x453   : > { %v1313_v54 = vsel %vm1312_vm0, %v1301_v48, %v1311_v50 }
 0x460   : > { %v1286_v52 = vpop.permute.xlu0 %1285 }
 0x461   : > { %vm1287_vm5 = vcmp.lt.s32.totalorder %v2214_v9, %v1286_v52 }
 0x467   : > { %v1265_v49 = vpop.xlane.xlu2 %1264 }
 0x468   : > { %v1268_v41 = vpop.xlane.xlu1 %1267  ;;  %v1282_v42 = vadd.f32 %v1274_v21, %v1265_v49 }
 0x469   : > { %v1283_v51 = vadd.f32 %v1274_v21, %v1268_v41 }
 0x46a   : > { %v1302_v53 = vperm.slane %v1282_v42, %v2214_v9 }
 0x46b   : > { %v1303_v34 = vperm.slane %v1283_v51, %v2214_v9 }
 0x46c   : > { %v1315_v56 = vsel %vm1314_vm1, %v1302_v53, %v1313_v54 }
 0x46d   : > { %v1317_v45 = vsel %vm1316_vm3, %v1303_v34, %v1315_v56 }
 0x46e   : > { %v1319_v46 = vsel %vm1287_vm5, %v1317_v45, -1e+30 }
 0x46f   : > { %v1320_v57 = vsel %vm888_vm4, %v1319_v46, -inf }
 0x470   : > { %1321 = vmax.xlane.f32.xlu2 %v1320_v57 }
 0x4e3   : > { %v1322_v58 = vpop.xlane.xlu2 %1321 }
 0x4e4   : > { %v1323_v61 = vsub.f32 %v1319_v46, %v1322_v58 }
 0x4e6   : > { %v1324_v62 = vmul.f32 1.442695, %v1323_v61 }
 0x4e8   : > { %1886 = vpow2.f32 %v1324_v62 }
 0x4ee   : > { %v1887_v1 = vpop.eup %1886 }
 0x4ef   : > { %v1326_v2 = vsel %vm888_vm4, %v1887_v1, 0.0  ;;  %vm1506_vm4 = vcmask 130048  }
 0x4f0   : > { %1327 = vadd.xlane.f32.xlu2 %v1326_v2 }
 0x563   : > { %v1328_v9 = vpop.xlane.xlu2 %1327 }
 0x564   : > { %1888 = vrcp.f32 %v1328_v9 }
 0x56a   : > { %v1889_v4 = vpop.eup %1888 }
 0x56b   : > { %v1330_v5 = vmul.f32 %v1889_v4, %v1328_v9 }
 0x56d   : > { %v1331_v40 = vsub.f32 2.0, %v1330_v5 }
 0x56f   : > { %v1332_v39 = vmul.f32 %v1889_v4, %v1331_v40 }
 0x571   : > { %v1333_v6 = vmul.f32 %v1887_v1, %v1332_v39 }
 0x573   : > { %v1355_v7 = vperm.slane %v1333_v6, 3  ;;  %v1341_v10 = vperm.slane %v1333_v6, 1  ;;  %v1334_v14 = vperm.slane %v1333_v6, 0  ;;  %v1348_v15 = vperm.slane %v1333_v6, 2 }
 0x574   : > { %v1362_v11 = vperm.slane %v1333_v6, 4  ;;  %v1369_v8 = vperm.slane %v1333_v6, 5  ;;  %v1376_v16 = vperm.slane %v1333_v6, 6  ;;  %v1383_v17 = vperm.slane %v1333_v6, 7 }
 0x575   : > { %1360 = vperm.xlu1 %1816, %v1355_v7   ;;  %1346 = vperm.xlu0 %1815, %v1341_v10  }
 0x576   : > { %1339 = vperm.xlu2 %1814, %v1334_v14  }
 0x57d   : > { %1353 = vperm.xlu0 %1815, %v1348_v15  }
 0x57e   : > { %1367 = vperm.xlu2 %1814, %v1362_v11  }
 0x585   : > { %1374 = vperm.xlu0 %1815, %v1369_v8  }
 0x586   : > { %1381 = vperm.xlu2 %1814, %v1376_v16  }
 0x58d   : > { %1388 = vperm.xlu0 %1815, %v1383_v17  }
 0x58e   : > { %1531 = vrot.lane.b32.xlu2 %v1333_v6, %s1989_s30  ;;  %s1571_s30 = sshll.u32 %s2283_s27, 4  ;;  %s1572_s30 = int_to_ptr.vmem [resolvable:$true] %s1571_s30 }
 0x5d0   : > { %v1340_v21 = vpop.permute.xlu2 %1339 }
 0x5d1   : > { %v1390_v26 = vmul.f32 %v1340_v21, %v2314_v33 }
 0x5d3   : > { %v1398_v29 = vsel %vm540_vm2, %v1390_v26, 0.0 }
 0x5d4   : > { %v1399_v32 = vrot.slane %v1398_v29, 4 }
 0x5d6   : > { %v1400_v36 = vadd.f32 %v1399_v32, %v1398_v29 }
 0x5d8   : > { %v1368_v25 = vpop.permute.xlu2 %1367  ;;  %v1401_v41 = vrot.slane %v1400_v36, 2 }
 0x5d9   : > { %v1394_v43 = vmul.f32 %v1368_v25, %v2331_v63 }
 0x5da   : > { %v1402_v46 = vadd.f32 %v1401_v41, %v1400_v36  ;;  %v1820_v36 = vld [vmem:[%s2474_s8] ss:$0 sm:$0xff] }
 0x5dc   : > { %v1403_v9 = vrot.slane %v1402_v46, 1 }
 0x5de   : > { %v1404_v15 = vadd.f32 %v1403_v9, %v1402_v46 }
 0x5e0   : > { %v1382_v35 = vpop.permute.xlu2 %1381 }
 0x5e1   : > { %v1396_v37 = vmul.f32 %v1382_v35, %v2341_v12 }
 0x5e3   : > { %v1440_v42 = vsel %vm540_vm2, %v1396_v37, 0.0 }
 0x5e4   : > { %v1441_v56 = vrot.slane %v1440_v42, 4 }
 0x5e6   : > { %v1442_v2 = vadd.f32 %v1441_v56, %v1440_v42 }
 0x5e7   : > { %v1361_v18 = vpop.permute.xlu1 %1360  ;;  %v1347_v27 = vpop.permute.xlu0 %1346 }
 0x5e8   : > { %v1391_v28 = vmul.f32 %v1347_v27, %v2320_v55  ;;  %v1393_v47 = vmul.f32 %v1361_v18, %v2327_v60  ;;  %v1426_v60 = vsel %vm540_vm2, %v1394_v43, 0.0  ;;  %v1443_v10 = vrot.slane %v1442_v2, 2 }
 0x5e9   : > { %v1427_v50 = vrot.slane %v1426_v60, 4 }
 0x5ea   : > { %v1405_v30 = vsel %vm540_vm2, %v1391_v28, 0.0  ;;  %v1419_v33 = vsel %vm540_vm2, %v1393_v47, 0.0  ;;  %v1444_v24 = vadd.f32 %v1443_v10, %v1442_v2 }
 0x5eb   : > { %v1406_v31 = vrot.slane %v1405_v30, 4  ;;  %v1420_v38 = vrot.slane %v1419_v33, 4 }
 0x5ec   : > { %v1445_v47 = vrot.slane %v1444_v24, 1 }
 0x5ed   : > { %v1407_v22 = vadd.f32 %v1406_v31, %v1405_v30  ;;  %v1421_v51 = vadd.f32 %v1420_v38, %v1419_v33 }
 0x5ee   : > { %v1446_v44 = vadd.f32 %v1445_v47, %v1444_v24 }
 0x5ef   : > { %v1354_v55 = vpop.permute.xlu0 %1353  ;;  %v1408_v48 = vrot.slane %v1407_v22, 2  ;;  %v1422_v12 = vrot.slane %v1421_v51, 2 }
 0x5f0   : > { %v1392_v23 = vmul.f32 %v1354_v55, %v2325_v59  ;;  %v1428_v59 = vadd.f32 %v1427_v50, %v1426_v60  ;;  %v1501_v55 = vld [vmem:[%s2475_s9 + $0x8] sm:$0xff] }
 0x5f1   : > { %v1409_v53 = vadd.f32 %v1408_v48, %v1407_v22  ;;  %v1423_v4 = vadd.f32 %v1422_v12, %v1421_v51  ;;  %1524 = vmatpush.msra.mxu2 %v1501_v55 }
 0x5f2   : > { %v1412_v63 = vsel %vm540_vm2, %v1392_v23, 0.0  ;;  %v1429_v1 = vrot.slane %v1428_v59, 2  ;;  %v1500_v23 = vld [vmem:[%s2475_s9] sm:$0xff] }
 0x5f3   : > { %v1413_v49 = vrot.slane %v1412_v63, 4  ;;  %v1410_v61 = vrot.slane %v1409_v53, 1  ;;  %v1424_v11 = vrot.slane %v1423_v4, 1  ;;  %1525 = vmatpush.msra.mxu2 %v1500_v23 }
 0x5f4   : > { %v1430_v7 = vadd.f32 %v1429_v1, %v1428_v59 }
 0x5f5   : > { %v1414_v52 = vadd.f32 %v1413_v49, %v1412_v63  ;;  %v1411_v40 = vadd.f32 %v1410_v61, %v1409_v53  ;;  %v1425_v26 = vadd.f32 %v1424_v11, %v1423_v4 }
 0x5f6   : > { %v1431_v21 = vrot.slane %v1430_v7, 1 }
 0x5f7   : > { %v1415_v34 = vrot.slane %v1414_v52, 2  ;;  %v1375_v54 = vpop.permute.xlu0 %1374  ;;  %v1470_v17 = vsel %vm1304_vm12, %v1411_v40, %v1404_v15 }
 0x5f8   : > { %v1395_v45 = vmul.f32 %v1375_v54, %v2333_v0 }
 0x5f9   : > { %v1416_v57 = vadd.f32 %v1415_v34, %v1414_v52 }
 0x5fa   : > { %v1433_v58 = vsel %vm540_vm2, %v1395_v45, 0.0 }
 0x5fb   : > { %v1434_v62 = vrot.slane %v1433_v58, 4  ;;  %v1417_v3 = vrot.slane %v1416_v57, 1 }
 0x5fd   : > { %v1435_v5 = vadd.f32 %v1434_v62, %v1433_v58  ;;  %v1418_v14 = vadd.f32 %v1417_v3, %v1416_v57 }
 0x5ff   : > { %v1436_v39 = vrot.slane %v1435_v5, 2  ;;  %v1389_v6 = vpop.permute.xlu0 %1388  ;;  %v1471_v25 = vsel %vm1306_vm13, %v1418_v14, %v1470_v17 }
 0x600   : > { %v1397_v0 = vmul.f32 %v1389_v6, %v2343_v13  ;;  %v1472_v29 = vsel %vm1308_vm14, %v1425_v26, %v1471_v25  ;;  %v1432_v13 = vadd.f32 %v1431_v21, %v1430_v7 }
 0x601   : > { %v1437_v8 = vadd.f32 %v1436_v39, %v1435_v5 }
 0x602   : > { %v1447_v16 = vsel %vm540_vm2, %v1397_v0, 0.0  ;;  %v1473_v31 = vsel %vm1310_vm15, %v1432_v13, %v1472_v29 }
 0x603   : > { %v1438_v19 = vrot.slane %v1437_v8, 1  ;;  %v1448_v20 = vrot.slane %v1447_v16, 4 }
 0x605   : > { %v1449_v18 = vadd.f32 %v1448_v20, %v1447_v16  ;;  %v1439_v27 = vadd.f32 %v1438_v19, %v1437_v8 }
 0x607   : > { %v1450_v28 = vrot.slane %v1449_v18, 2  ;;  %v1474_v43 = vsel %vm1312_vm0, %v1439_v27, %v1473_v31 }
 0x608   : > { %v1475_v33 = vsel %vm1314_vm1, %v1446_v44, %v1474_v43 }
 0x609   : > { %v1451_v30 = vadd.f32 %v1450_v28, %v1449_v18 }
 0x60b   : > { %v1452_v32 = vrot.slane %v1451_v30, 1 }
 0x60d   : > { %v1453_v35 = vadd.f32 %v1452_v32, %v1451_v30 }
 0x60f   : > { %v1476_v22 = vsel %vm1316_vm3, %v1453_v35, %v1475_v33 }
 0x610   : > { %1731 = vmatmul.msk.f32.vlgmr.msrb.gmra.mxu0 %vm540_vm2, %v1476_v22 }
 0x68d   : > { %v1496_v60 = vpop.f32.mrf.mxu0 }
 0x68e   : > { %v1497_v37 = vadd.f32 %v1820_v36, %v1496_v60 }
 0x690   : > { %v1499_v38 = vmax.f32 %v1497_v37, 0.0 }
 0x692   : > { %1732 = vmatmul.msk.f32.vlgmr.msra.gmra.mxu2 %vm1506_vm4, %v1499_v38 }
 0x693   : > { %1917 = shalt.err (!%p1914_p4)
}
 0x694   : > { %s1990_s0 = smov 128   ;;  %s1991_s29 = smov 8   ;;  %v1821_v63 = vld [vmem:[%s2476_s10] ss:$0 sm:$0xff]  ;;  %vm1534_vm2 = vcmask 23552   ;;  %vm1536_vm6 = vcmask 89088   ;;  %v1532_v50 = vpop.permute.xlu2 %1531 }
 0x695   : > { %1742 = dma.vmem_to_hbm [thread:$0]  (%p2098_p5), %s1572_s30, 1024, %s1574_s19, %s1545_s20, %s1990_s0, %s1990_s0, %s1991_s29  }
 0x696   : > { %s1685_s16 = sshll.u32 %s2277_s21, 3  ;;  %s1555_s2 = scalar_lea.hbm %s2477_s11, %s2112_s18 }
 0x697   : > { %s426_s22 = scalar_lea.vmem [#allocation3], %s1685_s16  ;;  %s1559_s6 = sshll.u32 %s1555_s2, 4  ;;  %s1560_s6 = int_to_ptr.hbm [resolvable:$true] %s1559_s6 }
 0x698   : > { %s1557_s1 = sshll.u32 %s426_s22, 4  ;;  %s1540_s5 = scalar_lea.sflag [#allocation4], %s2277_s21  ;;  %s1558_s1 = int_to_ptr.vmem [resolvable:$true] %s1557_s1 }
 0x699   : > { %s1932_s30 = sshra.s32 %s1560_s6, 4  ;;  %s1938_s27 = scalar_lea.hbm %s2477_s11, 24  ;;  %s1933_s30 = int_to_ptr.hbm [resolvable:$true] %s1932_s30 }
 0x69a   : > { %s1934_s19 = scalar_lea.hbm %s1933_s30, 8  ;;  %p1939_p10 = scmp.lt.s32.totalorder %s1933_s30, %s2477_s11 }
 0x69b   : > { %p1935_p7 = scmp.ne.s32.totalorder %s1933_s30, %s1934_s19  ;;  %p1940_p11 = scmp.lt.s32.totalorder %s1938_s27, %s1934_s19 }
 0x69d   : > { %p1936_p8 = pnand %p1935_p7, %p2098_p5  ;;  %p1941_p12 = por %p1940_p11, %p1939_p10 }
 0x69f   : > { %p1937_p9 = pneg %p1936_p8 }
 0x6a1   : > { %p1942_p13 = pnand %p1941_p12, %p1937_p9 }
 0x715   : > { %v1527_v48 = vpop.f32.mrf.mxu2 }
 0x716   : > { %v1528_v49 = vadd.f32 %v1821_v63, %v1527_v48 }
 0x718   : > { %v1535_v41 = vsel %vm1534_vm2, %v1528_v49, %v1532_v50 }
 0x719   : > { %v1537_v42 = vsel %vm1536_vm6, %v1535_v41, 0.0 }
 0x71a   : > { %1538 = vst [vmem:[%s426_s22] sm:$0xff] %v1537_v42 }
 0x71b   : > { %1945 = shalt.err (!%p1942_p13)
}
 0x71c   : > { %1741 = dma.vmem_to_hbm [thread:$0]  (%p2098_p5), %s1558_s1, 128, %s1560_s6, %s1540_s5  }
 0x71d PF: > { %p1752_p0 = scmp.ge.s32.totalorder %s1984_s26, 2  ;;  %s1588_s21 = sand.u32 1, %s1972_s23  }
 0x71e   : > { %s1589_s16 = scalar_lea.sflag [#allocation4], %s1588_s21 }
 0x71f   : > { %p1746_p1 = pnand %p1752_p0, %p2102_p6 }
 0x721   : > { %p1747_p2 = pneg %p1746_p1 }
 0x723   : > { %1963 = dma.done.wait (%p1747_p2), %s1589_s16, 128  }
 0x724   : > { %1965 = vsyncadd (%p1747_p2), %s1589_s16, 4294967168  ;;  %s1599_s17 = scalar_lea.sflag [#allocation6], %s1588_s21 }
 0x725   : > { %1967 = dma.done.wait (%p1747_p2), %s1599_s17, 1024  }
 0x726   : > { %1969 = vsyncadd (%p1747_p2), %s1599_s17, 4294966272  ;;  %p28_p5 = scmp.ge.s32.totalorder %s2085_s28, 5   ;;  %s2493_s23 = smov %s1976_s24 }
 0x727   : > { %s2494_s24 = smov %s1980_s25  ;;  %s2495_s25 = smov %s2096_s13 }
 0x728   : > { %s2496_s26 = smov %s2085_s28  ;;  %30 = sbr.rel (!%p28_p5) target bundleno = 12 (0xc), region = 119 }
 0x72d   :  { %1605 = vsyncpa [#allocation4], 1 }
 0x72e   :  { %1607 = vsyncpa [#allocation4 + $0x1], 1 }
 0x72f   :  { %1608 = vsyncpa [#allocation6], 1 }
 0x730   :  { %1610 = vsyncpa [#allocation6 + $0x1], 1 }

</bundles_post_ra>
